<compile_context>
chip_gen: v5e
topology: v5e:2x2
jax: 0.10.0
libtpu: 0.0.40
codegen_flags: <defaults>
</compile_context>

<pallas_src>
import math
import numpy as np
import jax
import jax.numpy as jnp
from jax import lax
from jax.experimental import pallas as pl
from jax.experimental.pallas import tpu as pltpu

BN_EPS = 1e-5
LANE = 128


def _round_up(v, m):
    return (v + m - 1) // m * m


def _pick_vmem_limit_bytes():
    """Scoped-VMEM budget per generation: v7x (64 MiB physical) -> 48 MiB,
       v5e/v6e (128 MiB physical) -> 96 MiB.  Safe fallback if query fails."""
    try:
        cap = pltpu.get_tpu_info().vmem_capacity_bytes
    except Exception:
        cap = 128 * 1024 * 1024
    return int(min(96 * 1024 * 1024, max(32 * 1024 * 1024, (cap * 3) // 4)))


# ----------------------------- Pallas kernels ------------------------------ #
def _make_conv_stats_kernel(kmax, TILE_H, H, W, C1, K, Kpad, C2pad, need_mask):
    """Pass 1: in-VMEM im2col (kmax^2 shifted slices of the resident padded
       image) -> one fused-K MXU matmul -> bf16 conv tile + f32 BN partials."""
    TILE_M = TILE_H * W

    def kernel(x_ref, w_ref, o_ref, st_ref):
        # x_ref : (H_pad+2p, W+2p, C1) bf16 -- whole padded image of batch n
        #         (grid-invariant along the row-tile axis -> one DMA per image)
        # w_ref : (Kpad, C2pad)        bf16 -- densified block-diagonal weight
        # o_ref : (TILE_M, C2pad)      bf16 -- conv output tile
        # st_ref: (1, 2*C2pad)         f32  -- lane-packed [sum | sum_sq]
        j = pl.program_id(1)
        row0 = j * TILE_H
        slabs = [x_ref[pl.ds(row0 + dy, TILE_H), dx:dx + W, :]
                 for dy in range(kmax) for dx in range(kmax)]
        if Kpad > K:                                      # lane-pad K for the MXU
            slabs.append(jnp.zeros((TILE_H, W, Kpad - K), x_ref.dtype))
        patches = jnp.concatenate(slabs, axis=-1) if len(slabs) > 1 else slabs[0]
        patches = patches.reshape(TILE_M, Kpad)           # fused im2col, VMEM only
        acc = jnp.dot(patches, w_ref[...], preferred_element_type=jnp.float32)
        o_ref[...] = acc.astype(o_ref.dtype)              # bf16 inter-pass store
        if need_mask:                                     # drop phantom rows >= H
            h_idx = row0 + lax.broadcasted_iota(jnp.int32, (TILE_M, 1), 0) // W
            acc = jnp.where(h_idx < H, acc, 0.0)
        st_ref[:, :C2pad] = jnp.sum(acc, axis=0, keepdims=True)
        st_ref[:, C2pad:] = jnp.sum(acc * acc, axis=0, keepdims=True)

    return kernel


def bn_silu_kernel(y_ref, scale_ref, shift_ref, o_ref):
    """Pass 2: y = conv*scale + shift ; out = y*sigmoid(y).  All math f32."""
    y = y_ref[...].astype(jnp.float32) * scale_ref[...] + shift_ref[...]
    o_ref[...] = (y * jax.nn.sigmoid(y)).astype(o_ref.dtype)


# ------------------------------ parameter setup ---------------------------- #
def mixconv_channel_split(c1, c2, k, equal_ch=True):
    n = len(k)
    if equal_ch:
        i = np.floor(np.linspace(0, n - 1e-6, c2))
        c_ = [int((i == g).sum()) for g in range(n)]
    else:
        b = [c2] + [0] * n
        a = np.eye(n + 1, n, k=-1)
        a -= np.roll(a, 1, axis=1)
        a *= np.array(k) ** 2
        a[0] = 1
        c_ = [int(v) for v in np.linalg.lstsq(a, b, rcond=None)[0].round()]
    return c_


def make_mixconv_params(c1, c2, k, key):
    """Deterministic synthetic parameters (PyTorch-shaped OIHW conv weights)."""
    c_ = mixconv_channel_split(c1, c2, k)
    keys = jax.random.split(key, len(k))
    weights = []
    for kg, cg, kk in zip(k, c_, keys):
        groups = math.gcd(c1, cg)
        w = 0.1 * jax.random.normal(kk, (cg, c1 // groups, kg, kg), jnp.float32)
        weights.append(w)
    gamma = jnp.ones((c2,), jnp.float32)   # BatchNorm2d init: weight = 1
    beta = jnp.zeros((c2,), jnp.float32)   # BatchNorm2d init: bias   = 0
    return weights, gamma, beta


def build_dense_weight(weights, c1, c2, k):
    """Densify grouped mixed convs into one (T*C1, C2) weight.
       Row index = tap*C1 + cin, tap = dy*kmax + dx (matches kernel tap order);
       smaller kernels are embedded at the center taps of the kmax window."""
    kmax = max(k)
    w_all = np.zeros((kmax, kmax, c1, c2), np.float32)
    off_out = 0
    for kg, w in zip(k, weights):
        w = np.asarray(w)                      # (cg, c1//groups, kg, kg) OIHW
        cg = w.shape[0]
        groups = math.gcd(c1, cg)
        in_pg, out_pg = c1 // groups, cg // groups
        pad = (kmax - kg) // 2
        for g in range(groups):
            blk = np.transpose(w[g * out_pg:(g + 1) * out_pg], (2, 3, 1, 0))
            w_all[pad:pad + kg, pad:pad + kg,
                  g * in_pg:(g + 1) * in_pg,
                  off_out + g * out_pg: off_out + (g + 1) * out_pg] = blk
        off_out += cg
    return w_all.reshape(kmax * kmax * c1, c2)


# ------------------------------- wrapper ----------------------------------- #
def mixconv2d_pallas(x_nchw, weights, gamma, beta, k=(1, 3)):
    # TODO(synk): stride s != 1 not implemented (module default s=1).
    N, C1, H, W = x_nchw.shape
    C2 = int(gamma.shape[0])
    kmax = max(k)
    p = kmax // 2
    T = kmax * kmax
    K = T * C1
    Kpad = _round_up(K, LANE)
    C2pad = _round_up(C2, LANE)
    vmem_limit = _pick_vmem_limit_bytes()

    # pass-1 tiling: TILE_H output rows per grid step (~512-row target).
    TILE_H = max(1, min(H, 512 // max(1, W)))
    if H >= 2:
        TILE_H = min(TILE_H, (H + 1) // 2)     # >=2 row tiles -> both v7x TCs busy
    if TILE_H >= 8:
        TILE_H -= TILE_H % 8                   # keep TILE_H*W a multiple of 8
    num_h = -(-H // TILE_H)
    H_pad = num_h * TILE_H
    need_mask = H_pad > H
    Wp = W + 2 * p
    H_halo = H_pad + 2 * p
    TILE_M1 = TILE_H * W
    M_big = N * H_pad * W
    # TODO(synk): for very large H*W*C1 images a halo-tiled row BlockSpec (or
    # manual DMA) would bound the per-image VMEM block; not needed here.

    # glue: cast to bf16 FIRST (halves glue traffic), NCHW->NHWC, zero-pad the
    # conv halo plus the H-rounding rows.  No im2col ever touches HBM.
    # TODO(synk): keep the surrounding model NHWC to drop both layout transposes.
    x_b = jnp.transpose(x_nchw.astype(jnp.bfloat16), (0, 2, 3, 1))
    xpad = jnp.pad(x_b, ((0, 0), (p, p + H_pad - H), (p, p), (0, 0)))

    w_dense = build_dense_weight(weights, C1, C2, k)       # (K, C2) f32
    w_pad = np.zeros((Kpad, C2pad), np.float32)
    w_pad[:K, :C2] = w_dense
    w_pad = jnp.asarray(w_pad, jnp.bfloat16)

    kernel1 = _make_conv_stats_kernel(kmax, TILE_H, H, W, C1, K, Kpad, C2pad,
                                      need_mask)
    cost1 = pl.CostEstimate(
        flops=2 * M_big * Kpad * C2pad,
        transcendentals=0,
        bytes_accessed=(N * H_halo * Wp * C1 * 2 + Kpad * C2pad * 2
                        + M_big * C2pad * 2 + N * num_h * 2 * C2pad * 4))

    def run_pass1(w_spec):
        return pl.pallas_call(
            kernel1,
            grid=(N, num_h),
            in_specs=[
                # whole padded image of batch n; index is invariant along j so
                # it is DMA'd once per image (read-x-once, no halo duplication).
                pl.BlockSpec((None, H_halo, Wp, C1), lambda n, j: (n, 0, 0, 0)),
                w_spec,
            ],
            out_specs=[
                pl.BlockSpec((TILE_M1, C2pad), lambda n, j: (n * num_h + j, 0)),
                pl.BlockSpec((None, None, 1, 2 * C2pad),
                             lambda n, j: (n, j, 0, 0)),
            ],
            out_shape=[
                jax.ShapeDtypeStruct((M_big, C2pad), jnp.bfloat16),
                jax.ShapeDtypeStruct((N, num_h, 1, 2 * C2pad), jnp.float32),
            ],
            compiler_params=pltpu.CompilerParams(
                dimension_semantics=("parallel", "parallel"),
                vmem_limit_bytes=vmem_limit),
            cost_estimate=cost1,
        )(xpad, w_pad)

    try:
        # grid-invariant weight -> single-buffer it (saves one weight copy of
        # VMEM; matters most on v7x's 64 MiB).  Fall back if unsupported.
        conv, stats = run_pass1(
            pl.BlockSpec((Kpad, C2pad), lambda n, j: (0, 0),
                         pipeline_mode=pl.Buffered(1)))
    except Exception:
        conv, stats = run_pass1(pl.BlockSpec((Kpad, C2pad), lambda n, j: (0, 0)))

    # glue: finalize training-mode BatchNorm statistics (tiny, f32).
    tot = jnp.sum(stats.reshape(-1, 2 * C2pad), axis=0)
    M_true = N * H * W
    mean = tot[:C2pad] / M_true
    var = jnp.maximum(tot[C2pad:] / M_true - mean * mean, 0.0)  # biased (train)
    gamma_p = jnp.pad(gamma.astype(jnp.float32), (0, C2pad - C2))
    beta_p = jnp.pad(beta.astype(jnp.float32), (0, C2pad - C2))
    scale = gamma_p * lax.rsqrt(var + BN_EPS)
    shift = beta_p - mean * scale

    # ---- pass 2: BN + SiLU, bigger streaming tiles, output aliased onto the
    # bf16 conv intermediate (no extra HBM allocation). ----------------------
    steps1 = N * num_h
    group = max(1, min(steps1, max(1, 1024 // TILE_M1)))
    while steps1 % group:
        group -= 1
    TILE_M2 = group * TILE_M1
    steps2 = steps1 // group
    cost2 = pl.CostEstimate(
        flops=5 * M_big * C2pad,
        transcendentals=M_big * C2pad,
        bytes_accessed=2 * M_big * C2pad * 2 + 2 * C2pad * 4)
    out_flat = pl.pallas_call(
        bn_silu_kernel,
        grid=(steps2,),
        in_specs=[
            pl.BlockSpec((TILE_M2, C2pad), lambda i: (i, 0)),
            pl.BlockSpec((1, C2pad), lambda i: (0, 0)),
            pl.BlockSpec((1, C2pad), lambda i: (0, 0)),
        ],
        out_specs=pl.BlockSpec((TILE_M2, C2pad), lambda i: (i, 0)),
        out_shape=jax.ShapeDtypeStruct((M_big, C2pad), jnp.bfloat16),
        input_output_aliases={0: 0},
        compiler_params=pltpu.CompilerParams(
            dimension_semantics=("parallel",),
            vmem_limit_bytes=vmem_limit),
        cost_estimate=cost2,
    )(conv, scale.reshape(1, C2pad), shift.reshape(1, C2pad))

    # glue: (M_big, C2pad) -> valid (N, H, W, C2) -> NCHW, f32.
    out = out_flat.reshape(N, H_pad, W, C2pad)[:, :H, :, :C2].astype(jnp.float32)
    return jnp.transpose(out, (0, 3, 1, 2))


# --------------------------- pure-JAX reference ----------------------------- #
def mixconv2d_reference(x_nchw, weights, gamma, beta, k=(1, 3)):
    C1 = x_nchw.shape[1]
    outs = []
    for kg, w in zip(k, weights):
        groups = math.gcd(C1, int(w.shape[0]))
        o = lax.conv_general_dilated(
            x_nchw, w, window_strides=(1, 1),
            padding=[(kg // 2, kg // 2)] * 2,
            dimension_numbers=("NCHW", "OIHW", "NCHW"),
            feature_group_count=groups)
        outs.append(o)
    y = jnp.concatenate(outs, axis=1)
    mean = jnp.mean(y, axis=(0, 2, 3), keepdims=True)
    var = jnp.mean((y - mean) ** 2, axis=(0, 2, 3), keepdims=True)
    yh = (y - mean) / jnp.sqrt(var + BN_EPS)
    yh = yh * gamma.reshape(1, -1, 1, 1) + beta.reshape(1, -1, 1, 1)
    return yh * (1.0 / (1.0 + jnp.exp(-yh)))


# --------------------------------- main ------------------------------------ #
if __name__ == "__main__":
    c1, c2, k = 4, 8, (1, 3)
    N, H, W = 2, 16, 16

    key = jax.random.PRNGKey(0)
    kx, kw = jax.random.split(key)
    x = jax.random.normal(kx, (N, c1, H, W), jnp.float32)
    weights, gamma, beta = make_mixconv_params(c1, c2, k, kw)

    out = jax.block_until_ready(mixconv2d_pallas(x, weights, gamma, beta, k))
    ref = jax.block_until_ready(mixconv2d_reference(x, weights, gamma, beta, k))

    # Tolerance budgets bf16 inputs/weights, bf16 conv intermediate and bf16
    # final store (f32 accumulate + f32 BN/SiLU math) vs the fully-f32 ref.
    np.testing.assert_allclose(np.asarray(out), np.asarray(ref),
                               rtol=2e-2, atol=3e-2)
    assert out.shape == (N, c2, H, W)
    print("KERNEL_OK")
</pallas_src>

<mosaic_0001>
module attributes {stable_mosaic.version = 11 : i64} {
  func.func @kernel(%arg0: i32, %arg1: i32, %arg2: memref<1x18x18x4xbf16, #tpu.memory_space<vmem>>, %arg3: memref<128x128xbf16, #tpu.memory_space<vmem>>, %arg4: memref<128x128xbf16, #tpu.memory_space<vmem>>, %arg5: memref<1x1x1x256xf32, #tpu.memory_space<vmem>>) attributes {dimension_semantics = [#tpu.dimension_semantics<parallel>, #tpu.dimension_semantics<parallel>], iteration_bounds = array<i64: 2, 2>, scalar_prefetch = 0 : i64, scratch_operands = 0 : i64, tpu.core_type = #tpu.core_type<tc>, window_params = [{transform_indices = @transform_0, window_bounds = array<i64: 1, 18, 18, 4>}, {pipeline_mode = #tpu.pipeline_mode<synchronous>, transform_indices = @transform_1, window_bounds = array<i64: 128, 128>}, {transform_indices = @transform_2, window_bounds = array<i64: 128, 128>}, {transform_indices = @transform_3, window_bounds = array<i64: 1, 1, 1, 256>}]} {
    %c8_i32 = arith.constant 8 : i32
    %0 = arith.muli %arg1, %c8_i32 : i32
    %c0_i32 = arith.constant 0 : i32
    %1 = arith.addi %0, %c0_i32 : i32
    %c0 = arith.constant 0 : index
    %2 = arith.index_cast %1 : i32 to index
    %c0_0 = arith.constant 0 : index
    %c0_1 = arith.constant 0 : index
    %3 = vector.load %arg2[%c0, %2, %c0_0, %c0_1] : memref<1x18x18x4xbf16, #tpu.memory_space<vmem>>, vector<1x8x16x4xbf16>
    %4 = vector.shape_cast %3 : vector<1x8x16x4xbf16> to vector<8x16x4xbf16>
    %c0_i32_2 = arith.constant 0 : i32
    %5 = arith.addi %0, %c0_i32_2 : i32
    %c0_3 = arith.constant 0 : index
    %6 = arith.index_cast %5 : i32 to index
    %c1 = arith.constant 1 : index
    %c0_4 = arith.constant 0 : index
    %7 = vector.load %arg2[%c0_3, %6, %c1, %c0_4] : memref<1x18x18x4xbf16, #tpu.memory_space<vmem>>, vector<1x8x16x4xbf16>
    %8 = vector.shape_cast %7 : vector<1x8x16x4xbf16> to vector<8x16x4xbf16>
    %c0_i32_5 = arith.constant 0 : i32
    %9 = arith.addi %0, %c0_i32_5 : i32
    %c0_6 = arith.constant 0 : index
    %10 = arith.index_cast %9 : i32 to index
    %c2 = arith.constant 2 : index
    %c0_7 = arith.constant 0 : index
    %11 = vector.load %arg2[%c0_6, %10, %c2, %c0_7] : memref<1x18x18x4xbf16, #tpu.memory_space<vmem>>, vector<1x8x16x4xbf16>
    %12 = vector.shape_cast %11 : vector<1x8x16x4xbf16> to vector<8x16x4xbf16>
    %c1_i32 = arith.constant 1 : i32
    %13 = arith.addi %0, %c1_i32 : i32
    %c0_8 = arith.constant 0 : index
    %14 = arith.index_cast %13 : i32 to index
    %c0_9 = arith.constant 0 : index
    %c0_10 = arith.constant 0 : index
    %15 = vector.load %arg2[%c0_8, %14, %c0_9, %c0_10] : memref<1x18x18x4xbf16, #tpu.memory_space<vmem>>, vector<1x8x16x4xbf16>
    %16 = vector.shape_cast %15 : vector<1x8x16x4xbf16> to vector<8x16x4xbf16>
    %c1_i32_11 = arith.constant 1 : i32
    %17 = arith.addi %0, %c1_i32_11 : i32
    %c0_12 = arith.constant 0 : index
    %18 = arith.index_cast %17 : i32 to index
    %c1_13 = arith.constant 1 : index
    %c0_14 = arith.constant 0 : index
    %19 = vector.load %arg2[%c0_12, %18, %c1_13, %c0_14] : memref<1x18x18x4xbf16, #tpu.memory_space<vmem>>, vector<1x8x16x4xbf16>
    %20 = vector.shape_cast %19 : vector<1x8x16x4xbf16> to vector<8x16x4xbf16>
    %c1_i32_15 = arith.constant 1 : i32
    %21 = arith.addi %0, %c1_i32_15 : i32
    %c0_16 = arith.constant 0 : index
    %22 = arith.index_cast %21 : i32 to index
    %c2_17 = arith.constant 2 : index
    %c0_18 = arith.constant 0 : index
    %23 = vector.load %arg2[%c0_16, %22, %c2_17, %c0_18] : memref<1x18x18x4xbf16, #tpu.memory_space<vmem>>, vector<1x8x16x4xbf16>
    %24 = vector.shape_cast %23 : vector<1x8x16x4xbf16> to vector<8x16x4xbf16>
    %c2_i32 = arith.constant 2 : i32
    %25 = arith.addi %0, %c2_i32 : i32
    %c0_19 = arith.constant 0 : index
    %26 = arith.index_cast %25 : i32 to index
    %c0_20 = arith.constant 0 : index
    %c0_21 = arith.constant 0 : index
    %27 = vector.load %arg2[%c0_19, %26, %c0_20, %c0_21] : memref<1x18x18x4xbf16, #tpu.memory_space<vmem>>, vector<1x8x16x4xbf16>
    %28 = vector.shape_cast %27 : vector<1x8x16x4xbf16> to vector<8x16x4xbf16>
    %c2_i32_22 = arith.constant 2 : i32
    %29 = arith.addi %0, %c2_i32_22 : i32
    %c0_23 = arith.constant 0 : index
    %30 = arith.index_cast %29 : i32 to index
    %c1_24 = arith.constant 1 : index
    %c0_25 = arith.constant 0 : index
    %31 = vector.load %arg2[%c0_23, %30, %c1_24, %c0_25] : memref<1x18x18x4xbf16, #tpu.memory_space<vmem>>, vector<1x8x16x4xbf16>
    %32 = vector.shape_cast %31 : vector<1x8x16x4xbf16> to vector<8x16x4xbf16>
    %c2_i32_26 = arith.constant 2 : i32
    %33 = arith.addi %0, %c2_i32_26 : i32
    %c0_27 = arith.constant 0 : index
    %34 = arith.index_cast %33 : i32 to index
    %c2_28 = arith.constant 2 : index
    %c0_29 = arith.constant 0 : index
    %35 = vector.load %arg2[%c0_27, %34, %c2_28, %c0_29] : memref<1x18x18x4xbf16, #tpu.memory_space<vmem>>, vector<1x8x16x4xbf16>
    %36 = vector.shape_cast %35 : vector<1x8x16x4xbf16> to vector<8x16x4xbf16>
    %cst = arith.constant 0.000000e+00 : bf16
    %37 = vector.broadcast %cst : bf16 to vector<8x16x92xbf16>
    %38 = tpu.concatenate %4, %8, %12, %16, %20, %24, %28, %32, %36, %37 in 2 : vector<8x16x4xbf16>, vector<8x16x4xbf16>, vector<8x16x4xbf16>, vector<8x16x4xbf16>, vector<8x16x4xbf16>, vector<8x16x4xbf16>, vector<8x16x4xbf16>, vector<8x16x4xbf16>, vector<8x16x4xbf16>, vector<8x16x92xbf16> -> vector<8x16x128xbf16>
    %39 = vector.shape_cast %38 : vector<8x16x128xbf16> to vector<128x128xbf16>
    %c0_30 = arith.constant 0 : index
    %c0_31 = arith.constant 0 : index
    %40 = vector.load %arg3[%c0_30, %c0_31] : memref<128x128xbf16, #tpu.memory_space<vmem>>, vector<128x128xbf16>
    %cst_32 = arith.constant dense<0.000000e+00> : vector<128x128xf32>
    %41 = tpu.matmul %39, %40, %cst_32 {dimension_numbers = #tpu.dot_dimension_numbers<[1], [0], [0], [1], [0, 0, 1, 1], [], []>} : vector<128x128xbf16>, vector<128x128xbf16>, vector<128x128xf32> -> vector<128x128xf32>
    %42 = arith.truncf %41 : vector<128x128xf32> to vector<128x128xbf16>
    %c0_33 = arith.constant 0 : index
    %c0_34 = arith.constant 0 : index
    %43 = vector.load %arg4[%c0_33, %c0_34] : memref<128x128xbf16, #tpu.memory_space<vmem>>, vector<128x128xbf16>
    tpu.vector_store %arg4[%c0_33, %c0_34], %42 {strides = array<i32>} : memref<128x128xbf16, #tpu.memory_space<vmem>>, vector<128x128xbf16>,
    %cst_35 = arith.constant dense<0.000000e+00> : vector<128xf32>
    %44 = vector.multi_reduction <add>, %41, %cst_35 [0] : vector<128x128xf32> to vector<128xf32>
    %45 = vector.shape_cast %44 : vector<128xf32> to vector<1x128xf32>
    %c0_36 = arith.constant 0 : index
    %c0_37 = arith.constant 0 : index
    %c0_38 = arith.constant 0 : index
    %c0_39 = arith.constant 0 : index
    %46 = vector.load %arg5[%c0_36, %c0_37, %c0_38, %c0_39] : memref<1x1x1x256xf32, #tpu.memory_space<vmem>>, vector<1x1x1x128xf32>
    %47 = vector.shape_cast %46 : vector<1x1x1x128xf32> to vector<1x128xf32>
    %48 = vector.shape_cast %45 : vector<1x128xf32> to vector<1x1x1x128xf32>
    tpu.vector_store %arg5[%c0_36, %c0_37, %c0_38, %c0_39], %48 {strides = array<i32>} : memref<1x1x1x256xf32, #tpu.memory_space<vmem>>, vector<1x1x1x128xf32>,
    %49 = arith.mulf %41, %41 : vector<128x128xf32>
    %cst_40 = arith.constant dense<0.000000e+00> : vector<128xf32>
    %50 = vector.multi_reduction <add>, %49, %cst_40 [0] : vector<128x128xf32> to vector<128xf32>
    %51 = vector.shape_cast %50 : vector<128xf32> to vector<1x128xf32>
    %c0_41 = arith.constant 0 : index
    %c0_42 = arith.constant 0 : index
    %c0_43 = arith.constant 0 : index
    %c128 = arith.constant 128 : index
    %52 = vector.load %arg5[%c0_41, %c0_42, %c0_43, %c128] : memref<1x1x1x256xf32, #tpu.memory_space<vmem>>, vector<1x1x1x128xf32>
    %53 = vector.shape_cast %52 : vector<1x1x1x128xf32> to vector<1x128xf32>
    %54 = vector.shape_cast %51 : vector<1x128xf32> to vector<1x1x1x128xf32>
    tpu.vector_store %arg5[%c0_41, %c0_42, %c0_43, %c128], %54 {strides = array<i32>} : memref<1x1x1x256xf32, #tpu.memory_space<vmem>>, vector<1x1x1x128xf32>,
    return
  }
  func.func @transform_0(%arg0: i32, %arg1: i32) -> (i32, i32, i32, i32) {
    %c0_i32 = arith.constant 0 : i32
    %c0_i32_0 = arith.constant 0 : i32
    %c0_i32_1 = arith.constant 0 : i32
    %c0_i32_2 = arith.constant 0 : i32
    return %arg0, %c0_i32, %c0_i32_0, %c0_i32_1 : i32, i32, i32, i32
  }
  func.func @transform_1(%arg0: i32, %arg1: i32) -> (i32, i32) {
    %c0_i32 = arith.constant 0 : i32
    %c0_i32_0 = arith.constant 0 : i32
    %c0_i32_1 = arith.constant 0 : i32
    return %c0_i32, %c0_i32_0 : i32, i32
  }
  func.func @transform_2(%arg0: i32, %arg1: i32) -> (i32, i32) {
    %c2_i32 = arith.constant 2 : i32
    %0 = arith.muli %arg0, %c2_i32 : i32
    %1 = arith.addi %0, %arg1 : i32
    %c0_i32 = arith.constant 0 : i32
    %c0_i32_0 = arith.constant 0 : i32
    return %1, %c0_i32 : i32, i32
  }
  func.func @transform_3(%arg0: i32, %arg1: i32) -> (i32, i32, i32, i32) {
    %c0_i32 = arith.constant 0 : i32
    %c0_i32_0 = arith.constant 0 : i32
    %c0_i32_1 = arith.constant 0 : i32
    return %arg0, %arg1, %c0_i32, %c0_i32_0 : i32, i32, i32, i32
  }
}

module attributes {stable_mosaic.version = 11 : i64} {
  func.func @kernel(%arg0: i32, %arg1: i32, %arg2: memref<1x18x18x4xbf16, #tpu.memory_space<vmem>>, %arg3: memref<128x128xbf16, #tpu.memory_space<vmem>>, %arg4: memref<128x128xbf16, #tpu.memory_space<vmem>>, %arg5: memref<1x1x1x256xf32, #tpu.memory_space<vmem>>) attributes {dimension_semantics = [#tpu.dimension_semantics<parallel>, #tpu.dimension_semantics<parallel>], iteration_bounds = array<i64: 2, 2>, scalar_prefetch = 0 : i64, scratch_operands = 0 : i64, tpu.core_type = #tpu.core_type<tc>, window_params = [{transform_indices = @transform_0, window_bounds = array<i64: 1, 18, 18, 4>}, {pipeline_mode = #tpu.pipeline_mode<synchronous>, transform_indices = @transform_1, window_bounds = array<i64: 128, 128>}, {transform_indices = @transform_2, window_bounds = array<i64: 128, 128>}, {transform_indices = @transform_3, window_bounds = array<i64: 1, 1, 1, 256>}]} {
    %c8_i32 = arith.constant 8 : i32
    %0 = arith.muli %arg1, %c8_i32 : i32
    %c0_i32 = arith.constant 0 : i32
    %1 = arith.addi %0, %c0_i32 : i32
    %c0 = arith.constant 0 : index
    %2 = arith.index_cast %1 : i32 to index
    %c0_0 = arith.constant 0 : index
    %c0_1 = arith.constant 0 : index
    %3 = vector.load %arg2[%c0, %2, %c0_0, %c0_1] : memref<1x18x18x4xbf16, #tpu.memory_space<vmem>>, vector<1x8x16x4xbf16>
    %4 = vector.shape_cast %3 : vector<1x8x16x4xbf16> to vector<8x16x4xbf16>
    %c0_i32_2 = arith.constant 0 : i32
    %5 = arith.addi %0, %c0_i32_2 : i32
    %c0_3 = arith.constant 0 : index
    %6 = arith.index_cast %5 : i32 to index
    %c1 = arith.constant 1 : index
    %c0_4 = arith.constant 0 : index
    %7 = vector.load %arg2[%c0_3, %6, %c1, %c0_4] : memref<1x18x18x4xbf16, #tpu.memory_space<vmem>>, vector<1x8x16x4xbf16>
    %8 = vector.shape_cast %7 : vector<1x8x16x4xbf16> to vector<8x16x4xbf16>
    %c0_i32_5 = arith.constant 0 : i32
    %9 = arith.addi %0, %c0_i32_5 : i32
    %c0_6 = arith.constant 0 : index
    %10 = arith.index_cast %9 : i32 to index
    %c2 = arith.constant 2 : index
    %c0_7 = arith.constant 0 : index
    %11 = vector.load %arg2[%c0_6, %10, %c2, %c0_7] : memref<1x18x18x4xbf16, #tpu.memory_space<vmem>>, vector<1x8x16x4xbf16>
    %12 = vector.shape_cast %11 : vector<1x8x16x4xbf16> to vector<8x16x4xbf16>
    %c1_i32 = arith.constant 1 : i32
    %13 = arith.addi %0, %c1_i32 : i32
    %c0_8 = arith.constant 0 : index
    %14 = arith.index_cast %13 : i32 to index
    %c0_9 = arith.constant 0 : index
    %c0_10 = arith.constant 0 : index
    %15 = vector.load %arg2[%c0_8, %14, %c0_9, %c0_10] : memref<1x18x18x4xbf16, #tpu.memory_space<vmem>>, vector<1x8x16x4xbf16>
    %16 = vector.shape_cast %15 : vector<1x8x16x4xbf16> to vector<8x16x4xbf16>
    %c1_i32_11 = arith.constant 1 : i32
    %17 = arith.addi %0, %c1_i32_11 : i32
    %c0_12 = arith.constant 0 : index
    %18 = arith.index_cast %17 : i32 to index
    %c1_13 = arith.constant 1 : index
    %c0_14 = arith.constant 0 : index
    %19 = vector.load %arg2[%c0_12, %18, %c1_13, %c0_14] : memref<1x18x18x4xbf16, #tpu.memory_space<vmem>>, vector<1x8x16x4xbf16>
    %20 = vector.shape_cast %19 : vector<1x8x16x4xbf16> to vector<8x16x4xbf16>
    %c1_i32_15 = arith.constant 1 : i32
    %21 = arith.addi %0, %c1_i32_15 : i32
    %c0_16 = arith.constant 0 : index
    %22 = arith.index_cast %21 : i32 to index
    %c2_17 = arith.constant 2 : index
    %c0_18 = arith.constant 0 : index
    %23 = vector.load %arg2[%c0_16, %22, %c2_17, %c0_18] : memref<1x18x18x4xbf16, #tpu.memory_space<vmem>>, vector<1x8x16x4xbf16>
    %24 = vector.shape_cast %23 : vector<1x8x16x4xbf16> to vector<8x16x4xbf16>
    %c2_i32 = arith.constant 2 : i32
    %25 = arith.addi %0, %c2_i32 : i32
    %c0_19 = arith.constant 0 : index
    %26 = arith.index_cast %25 : i32 to index
    %c0_20 = arith.constant 0 : index
    %c0_21 = arith.constant 0 : index
    %27 = vector.load %arg2[%c0_19, %26, %c0_20, %c0_21] : memref<1x18x18x4xbf16, #tpu.memory_space<vmem>>, vector<1x8x16x4xbf16>
    %28 = vector.shape_cast %27 : vector<1x8x16x4xbf16> to vector<8x16x4xbf16>
    %c2_i32_22 = arith.constant 2 : i32
    %29 = arith.addi %0, %c2_i32_22 : i32
    %c0_23 = arith.constant 0 : index
    %30 = arith.index_cast %29 : i32 to index
    %c1_24 = arith.constant 1 : index
    %c0_25 = arith.constant 0 : index
    %31 = vector.load %arg2[%c0_23, %30, %c1_24, %c0_25] : memref<1x18x18x4xbf16, #tpu.memory_space<vmem>>, vector<1x8x16x4xbf16>
    %32 = vector.shape_cast %31 : vector<1x8x16x4xbf16> to vector<8x16x4xbf16>
    %c2_i32_26 = arith.constant 2 : i32
    %33 = arith.addi %0, %c2_i32_26 : i32
    %c0_27 = arith.constant 0 : index
    %34 = arith.index_cast %33 : i32 to index
    %c2_28 = arith.constant 2 : index
    %c0_29 = arith.constant 0 : index
    %35 = vector.load %arg2[%c0_27, %34, %c2_28, %c0_29] : memref<1x18x18x4xbf16, #tpu.memory_space<vmem>>, vector<1x8x16x4xbf16>
    %36 = vector.shape_cast %35 : vector<1x8x16x4xbf16> to vector<8x16x4xbf16>
    %cst = arith.constant 0.000000e+00 : bf16
    %37 = vector.broadcast %cst : bf16 to vector<8x16x92xbf16>
    %38 = tpu.concatenate %4, %8, %12, %16, %20, %24, %28, %32, %36, %37 in 2 : vector<8x16x4xbf16>, vector<8x16x4xbf16>, vector<8x16x4xbf16>, vector<8x16x4xbf16>, vector<8x16x4xbf16>, vector<8x16x4xbf16>, vector<8x16x4xbf16>, vector<8x16x4xbf16>, vector<8x16x4xbf16>, vector<8x16x92xbf16> -> vector<8x16x128xbf16>
    %39 = vector.shape_cast %38 : vector<8x16x128xbf16> to vector<128x128xbf16>
    %c0_30 = arith.constant 0 : index
    %c0_31 = arith.constant 0 : index
    %40 = vector.load %arg3[%c0_30, %c0_31] : memref<128x128xbf16, #tpu.memory_space<vmem>>, vector<128x128xbf16>
    %cst_32 = arith.constant dense<0.000000e+00> : vector<128x128xf32>
    %41 = tpu.matmul %39, %40, %cst_32 {dimension_numbers = #tpu.dot_dimension_numbers<[1], [0], [0], [1], [0, 0, 1, 1], [], []>} : vector<128x128xbf16>, vector<128x128xbf16>, vector<128x128xf32> -> vector<128x128xf32>
    %42 = arith.truncf %41 : vector<128x128xf32> to vector<128x128xbf16>
    %c0_33 = arith.constant 0 : index
    %c0_34 = arith.constant 0 : index
    %43 = vector.load %arg4[%c0_33, %c0_34] : memref<128x128xbf16, #tpu.memory_space<vmem>>, vector<128x128xbf16>
    tpu.vector_store %arg4[%c0_33, %c0_34], %42 {strides = array<i32>} : memref<128x128xbf16, #tpu.memory_space<vmem>>, vector<128x128xbf16>,
    %cst_35 = arith.constant dense<0.000000e+00> : vector<128xf32>
    %44 = vector.multi_reduction <add>, %41, %cst_35 [0] : vector<128x128xf32> to vector<128xf32>
    %45 = vector.shape_cast %44 : vector<128xf32> to vector<1x128xf32>
    %c0_36 = arith.constant 0 : index
    %c0_37 = arith.constant 0 : index
    %c0_38 = arith.constant 0 : index
    %c0_39 = arith.constant 0 : index
    %46 = vector.load %arg5[%c0_36, %c0_37, %c0_38, %c0_39] : memref<1x1x1x256xf32, #tpu.memory_space<vmem>>, vector<1x1x1x128xf32>
    %47 = vector.shape_cast %46 : vector<1x1x1x128xf32> to vector<1x128xf32>
    %48 = vector.shape_cast %45 : vector<1x128xf32> to vector<1x1x1x128xf32>
    tpu.vector_store %arg5[%c0_36, %c0_37, %c0_38, %c0_39], %48 {strides = array<i32>} : memref<1x1x1x256xf32, #tpu.memory_space<vmem>>, vector<1x1x1x128xf32>,
    %49 = arith.mulf %41, %41 : vector<128x128xf32>
    %cst_40 = arith.constant dense<0.000000e+00> : vector<128xf32>
    %50 = vector.multi_reduction <add>, %49, %cst_40 [0] : vector<128x128xf32> to vector<128xf32>
    %51 = vector.shape_cast %50 : vector<128xf32> to vector<1x128xf32>
    %c0_41 = arith.constant 0 : index
    %c0_42 = arith.constant 0 : index
    %c0_43 = arith.constant 0 : index
    %c128 = arith.constant 128 : index
    %52 = vector.load %arg5[%c0_41, %c0_42, %c0_43, %c128] : memref<1x1x1x256xf32, #tpu.memory_space<vmem>>, vector<1x1x1x128xf32>
    %53 = vector.shape_cast %52 : vector<1x1x1x128xf32> to vector<1x128xf32>
    %54 = vector.shape_cast %51 : vector<1x128xf32> to vector<1x1x1x128xf32>
    tpu.vector_store %arg5[%c0_41, %c0_42, %c0_43, %c128], %54 {strides = array<i32>} : memref<1x1x1x256xf32, #tpu.memory_space<vmem>>, vector<1x1x1x128xf32>,
    return
  }
  func.func @transform_0(%arg0: i32, %arg1: i32) -> (i32, i32, i32, i32) {
    %c0_i32 = arith.constant 0 : i32
    %c0_i32_0 = arith.constant 0 : i32
    %c0_i32_1 = arith.constant 0 : i32
    %c0_i32_2 = arith.constant 0 : i32
    return %arg0, %c0_i32, %c0_i32_0, %c0_i32_1 : i32, i32, i32, i32
  }
  func.func @transform_1(%arg0: i32, %arg1: i32) -> (i32, i32) {
    %c0_i32 = arith.constant 0 : i32
    %c0_i32_0 = arith.constant 0 : i32
    %c0_i32_1 = arith.constant 0 : i32
    return %c0_i32, %c0_i32_0 : i32, i32
  }
  func.func @transform_2(%arg0: i32, %arg1: i32) -> (i32, i32) {
    %c2_i32 = arith.constant 2 : i32
    %0 = arith.muli %arg0, %c2_i32 : i32
    %1 = arith.addi %0, %arg1 : i32
    %c0_i32 = arith.constant 0 : i32
    %c0_i32_0 = arith.constant 0 : i32
    return %1, %c0_i32 : i32, i32
  }
  func.func @transform_3(%arg0: i32, %arg1: i32) -> (i32, i32, i32, i32) {
    %c0_i32 = arith.constant 0 : i32
    %c0_i32_0 = arith.constant 0 : i32
    %c0_i32_1 = arith.constant 0 : i32
    return %arg0, %arg1, %c0_i32, %c0_i32_0 : i32, i32, i32, i32
  }
}

</mosaic_0001>

<bundles_post_ra>
// kernel: tpu_custom_call.1
= control target key start
LH: loop header
LB: loop body
LE: loop exit
PB: predicated region body
PF: predicated region fallthrough
CT: control target
= control target key end

     0   :  { %s2899_s0 = inlined_call_operand.vmem [shape: bf16[2,18,18,4], index: 0, kind: input, shape index: {}]   ;;  %s2900_s1 = inlined_call_operand.vmem [shape: bf16[128,128], index: 1, kind: input, shape index: {}]   ;;  %s2901_s2 = inlined_call_operand.hbm [shape: bf16[512,128], index: 2, kind: output, shape index: {0}]   ;;  %s2902_s3 = inlined_call_operand.hbm [shape: f32[2,2,1,256], index: 3, kind: output, shape index: {1}]  }
   0x1   :  { %2912 = sst [smem:[#allocation12_spill]] %s2899_s0 }
   0x2   :  { %2913 = sst [smem:[#allocation13_spill]] %s2900_s1 }
   0x3   :  { %9 = vsyncpa [#allocation3], 0 }
   0x4   :  { %11 = vsyncpa [#allocation3 + $0x1], 0 }
   0x5   :  { %12 = vsyncpa [#allocation5], 0 }
   0x6   :  { %14 = vsyncpa [#allocation5 + $0x1], 0  ;;  %s2220_s12 = smov 0   ;;  %s2222_s13 = smov 0  }
   0x7   :  { %s2224_s14 = smov 0   ;;  %s2226_s15 = smov 0  }
   0x8   :  { %s2228_s16 = smov 0   ;;  %s2230_s17 = smov 0  }
   0x9   :  { %s2232_s18 = smov 0   ;;  %s2234_s19 = smov 0  }
   0xa   :  { %s2236_s20 = smov 0   ;;  %s2238_s21 = smov 0  }
   0xb   :  { %s2240_s22 = smov 0  }
   0xc LB: > { %2914 = sst [smem:[#allocation8_spill]] %s2161_s15  ;;  %s1586_s23 = sadd.s32 4294967295, %s2189_s22   ;;  %s2189_s22 = sphi %s2240_s22, %s20_s22   ;;  %s2185_s21 = sphi %s2238_s21, %s2943_s21   ;;  %s2181_s20 = sphi %s2236_s20, %s2934_s20   ;;  %s2177_s19 = sphi %s2234_s19, %s2942_s19   ;;  %s2173_s18 = sphi %s2232_s18, %s2933_s18   ;;  %s2169_s17 = sphi %s2230_s17, %s2941_s17   ;;  %s2165_s16 = sphi %s2228_s16, %s2940_s16   ;;  %s2161_s15 = sphi %s2226_s15, %s2939_s15   ;;  %s2157_s14 = sphi %s2224_s14, %s2938_s14   ;;  %s2153_s13 = sphi %s2222_s13, %s2937_s13   ;;  %s2149_s12 = sphi %s2220_s12, %s2936_s12  }
   0xd   : > { %2915 = sst [smem:[#allocation9_spill]] %s2181_s20  ;;  %s1587_s24 = sadd.s32 4294967294, %s2189_s22  }
   0xe   : > { %s29_s25 = sadd.s32 1, %s2181_s20  ;;  %s32_s26 = sadd.s32 1, %s2185_s21 }
   0xf   : > { %p30_p0 = scmp.ge.s32.totalorder %s29_s25, 2  ;;  %s1588_s27 = sshll.u32 %s2185_s21, 1 }
  0x10   : > { %s84_s28 = sadd.s32 %s2181_s20, %s1588_s27  ;;  %s90_s29 = sadd.s32 1, %s2169_s17 }
  0x11   : > { %s2945_s25 = smov (%p30_p0, %s29_s25), 0  ;;  %s2947_s26 = smov (!%p30_p0, %s32_s26), %s2185_s21 }
  0x12   : > { %2916 = sst [smem:[#allocation10_spill]] %s2945_s25  ;;  %p100_p1 = scmp.ne.s32.totalorder %s2169_s17, %s2165_s16 }
  0x13   : > { %p2287_p2 = scmp.eq.s32.totalorder %s1586_s23, 3  ;;  %p34_p3 = scmp.ge.s32.totalorder %s2947_s26, 2 }
  0x14   : > { %p106_p4 = scmp.ne.s32.totalorder %s2165_s16, %s2161_s15  ;;  %p2299_p6 = scmp.eq.s32.totalorder %s1587_s24, 3 }
  0x15   : > { %p2295_p5 = por %p2287_p2, %p100_p1  ;;  %s2949_s26 = smov (%p34_p3, %s2947_s26), 0 }
  0x16   : > { %2920 = sst [smem:[#allocation11_spill]] %s2949_s26  ;;  %p2307_p7 = por %p2299_p6, %p106_p4 }
  0x17   : > { %s114_s7 = ssub.s32 %s2181_s20, %s2945_s25  ;;  %s1589_s8 = sshll.u32 %s2949_s26, 1 }
  0x18   : > { %s113_s9 = ssub.s32 %s2185_s21, %s2949_s26  ;;  %s86_s10 = sadd.s32 %s1589_s8, %s2945_s25 }
  0x19   : > { %s115_s11 = sor.u32 %s114_s7, %s113_s9  ;;  %s87_s23 = ssub.s32 %s84_s28, %s86_s10 }
  0x1a   : > { %p116_p8 = scmp.eq.s32.totalorder %s115_s11, 0  ;;  %p88_p9 = scmp.eq.s32.totalorder %s87_s23, 0 }
  0x1b   : > { %s118_s24 = sadd.s32 1, %s2157_s14  ;;  %p128_p10 = scmp.ne.s32.totalorder %s2157_s14, %s2153_s13 }
  0x1c   : > { %s2319_s27 = scalar_select %p116_p8, %s2157_s14, %s118_s24  }
  0x1d   : > { %s2322_s15 = scalar_select %p88_p9, %s2169_s17, %s90_s29  }
  0x1e   : > { %p134_p11 = scmp.ne.s32.totalorder %s2153_s13, %s2149_s12  ;;  %p1592_p12 = scmp.ge.s32.totalorder %s2189_s22, 1 }
  0x1f   : > { %p164_p13 = scmp.lt.s32.totalorder %s2189_s22, 5  ;;  %p2332_p0 = por %p128_p10, %p2287_p2 }
  0x20   : > { %p2338_p1 = por %p134_p11, %p2299_p6 }
  0x21   : > { %p165_p3 = pnand %p1592_p12, %p164_p13 }
  0x22   : > { %p193_p4 = scmp.lt.s32.totalorder (!%p165_p3), %s2177_s19, 1  ;;  %s1716_s29 = smul.u32 (!%p165_p3), 96, %s2173_s18 }
  0x23   : > { %168 = sbr.rel (%p165_p3) target bundleno = 500 (0x1f4), region = 28  ;;  %s2924_s0 = sld [smem:[#allocation12_spill]] (!%p165_p3) }
  0x24   : > { %s2191_s5 = smov (!%p165_p3), 24   ;;  %s2192_s23 = smov (!%p165_p3), 12  }
  0x25   : > { %s2193_s24 = smov (!%p165_p3), 8   ;;  %s2197_s9 = smov (!%p165_p3), 16  }
  0x26   : > { %s2198_s30 = smov (!%p165_p3), 28   ;;  %s2925_s1 = sld [smem:[#allocation13_spill]] (!%p165_p3) }
  0x27   : > { %s2059_s26 = scalar_lea.hbm (!%p165_p3), %s2901_s2, 256 }
  0x28   : > { %s194_s28 = scalar_select %p193_p4, %s2177_s19, 1  ;;  %vm511_vm0 = vcmask 1046528   ;;  %vm374_vm1 = vsmask.f32 7424  ;;  %vm1064_vm2 = vcmask 31744   ;;  %vm1081_vm3 = vcmask 64512  }
  0x29   : > { %vm1098_vm4 = vcmask 97280   ;;  %vm1115_vm5 = vcmask 130048   ;;  %vm1132_vm6 = vcmask 162816   ;;  %vm1149_vm7 = vcmask 195584  }
  0x2a   : > { %s1892_s8 = smul.u32 216, %s194_s28  ;;  %s2905_s28 = smov 32   ;;  %vm1166_vm8 = vcmask 228352   ;;  %vm1183_vm9 = vcmask 261120   ;;  %vm1200_vm10 = vcmask 293888  }
  0x2c   : > { %s197_s10 = scalar_lea.vmem %s2924_s0, %s1892_s8  ;;  %s2907_s8 = smov 20  }
  0x2d   : > { %s2348_s11 = scalar_lea.vmem %s197_s10, %s1716_s29  ;;  %s2909_s29 = smov 4  }
  0x2e   : > { %v1601_v0 = vld [vmem:[%s2348_s11 + $0xc] sm:$0xff]   ;;  %v1825_v2 = vld [vmem:[%s2348_s11] sm:$0xf0]  ;;  %v222_v3 = vld [vmem:[%s2348_s11 + $0x8] sm:$0x1] }
  0x2f   : > { %v2352_v1 = vld [vmem:[%s2348_s11 + $0xc] sm:$0xf0]  ;;  %v1826_v4 = vld [vmem:[%s2348_s11] sm:$0xe]  ;;  %v358_v5 = vunpack.c.l.b16 %v222_v3  ;;  %v1849_v6 = vld [vmem:[%s2348_s11 + $0x18] sm:$0xf0]  ;;  %592 = vrot.lane.b32.xlu1 %v1601_v0, %s2192_s23 }
  0x30   : > { %v1651_v7 = vld [vmem:[%s2348_s11 + $0x20] sm:$0x1]  ;;  %v1827_v8 = vor.u32 %v1826_v4, %v1825_v2  ;;  %v1850_v9 = vld [vmem:[%s2348_s11 + $0x18] sm:$0xe]  ;;  %v1617_v12 = vld [vmem:[%s2348_s11 + $0x14] sm:$0x1] }
  0x31   : > { %v872_v10 = vunpack.c.l.b16 %v1651_v7  ;;  %v2361_v11 = vld [vmem:[%s2348_s11] sm:$0xff]   ;;  %v366_v13 = vpack.c.b16 %v358_v5, %v358_v5  ;;  %v1851_v14 = vor.u32 %v1850_v9, %v1849_v6  ;;  %v2366_v16 = vld [vmem:[%s2348_s11 + $0x18] sm:$0xff]   ;;  %v616_v20 = vunpack.c.l.b16 %v1617_v12  ;;  %v2004_v38 = vld [vmem:[%s2348_s11 + $0xc] sm:$0xe] }
  0x32   : > { %v376_v15 = vshrl.u32 %v2361_v11, 16  ;;  %v512_v17 = vrot.slane %v1827_v8, 1  ;;  %v378_v19 = vshll.u32 %v2361_v11, 16  ;;  %848 = vrot.lane.b32.xlu2 %v2366_v16, %s2191_s5  ;;  %v635_v21 = vshll.u32 %v1601_v0, 16  ;;  %v226_v28 = vld [vmem:[%s2348_s11 + $0x38] sm:$0x1] }
  0x33   : > { %v880_v18 = vpack.c.b16 %v872_v10, %v872_v10  ;;  %v513_v22 = vrot.slane %v366_v13, 1  ;;  %v383_v23 = vshll.u32 %v366_v13, 16  ;;  %v1024_v24 = vrot.slane %v1851_v14, 1  ;;  %v224_v34 = vld [vmem:[%s2348_s11 + $0x20] sm:$0x1]  ;;  %v2380_v40 = vld [vmem:[%s2348_s11 + $0x30] sm:$0xff]  }
  0x34   : > { %v380_v26 = vrot.slane %v378_v19, 1  ;;  %v624_v27 = vpack.c.b16 %v616_v20, %v616_v20  ;;  %v633_v32 = vshrl.u32 %v1601_v0, 16  ;;  %v637_v33 = vrot.slane %v635_v21, 1  ;;  %v2384_v43 = vld [vmem:[%s2348_s11 + $0x24] sm:$0xff]   ;;  %v1619_v55 = vld [vmem:[%s2348_s11 + $0x2c] sm:$0x1] }
  0x35   : > { %v1025_v25 = vrot.slane %v880_v18, 1  ;;  %v514_v29 = vsel %vm511_vm0, %v512_v17, %v513_v22  ;;  %v385_v31 = vrot.slane %v383_v23, 1  ;;  %v891_v36 = vshll.u32 %v2366_v16, 16  ;;  %v2387_v44 = vld [vmem:[%s2348_s11 + $0x24] sm:$0xf0]  ;;  %v1609_v4 = vld [vmem:[%s2348_s11 + $0x3c] sm:$0xff]  }
  0x36   : > { %536 = vrot.lane.b32.xlu0 %v514_v29, %s2193_s24  ;;  %v381_v30 = vor.u32 %v380_v26, %v376_v15  ;;  %v640_v35 = vshll.u32 %v624_v27, 16  ;;  %v362_v37 = vunpack.c.l.b16 %v226_v28  ;;  %v889_v41 = vshrl.u32 %v2366_v16, 16  ;;  %v1828_v0 = vld [vmem:[%s2348_s11 + $0x18] sm:$0xf0]  ;;  %v2408_v5 = vld [vmem:[%s2348_s11 + $0x3c] sm:$0xf0] }
  0x37   : > { %v1026_v39 = vsel %vm511_vm0, %v1024_v24, %v1025_v25  ;;  %v360_v42 = vunpack.c.l.b16 %v224_v34  ;;  %v638_v46 = vor.u32 %v637_v33, %v633_v32  ;;  %v896_v47 = vshll.u32 %v880_v18, 16  ;;  %v1621_v14 = vld [vmem:[%s2348_s11 + $0x44] sm:$0x1]  ;;  %v1831_v23 = vld [vmem:[%s2348_s11 + $0x30] sm:$0xf0] }
  0x38   : > { %v386_v45 = vsel %vm374_vm1, %v381_v30, %v385_v31  ;;  %1048 = vrot.lane.b32.xlu1 %v1026_v39, %s2905_s28  ;;  %v642_v48 = vrot.slane %v640_v35, 1  ;;  %v893_v49 = vrot.slane %v891_v36, 1  ;;  %v2391_v50 = vpack.c.b16 %v362_v37, %v362_v37  ;;  %v1832_v24 = vld [vmem:[%s2348_s11 + $0x30] sm:$0xe]  ;;  %v2007_v32 = vld [vmem:[%s2348_s11 + $0x24] sm:$0xe] }
  0x39   : > { %v426_v51 = vshll.u32 %v2380_v40, 16  ;;  %v368_v52 = vpack.c.b16 %v360_v42, %v360_v42  ;;  %v2005_v53 = vor.u32 %v2004_v38, %v2352_v1  ;;  %v769_v54 = vrot.slane %v624_v27, 1  ;;  %v1829_v1 = vld [vmem:[%s2348_s11 + $0x18] sm:$0xe]  ;;  %v1653_v33 = vld [vmem:[%s2348_s11 + $0x38] sm:$0x1] }
  0x3a   : > { %v424_v56 = vshrl.u32 %v2380_v40, 16  ;;  %v2398_v59 = vor.u32 %v893_v49, %v889_v41  ;;  %v898_v60 = vrot.slane %v896_v47, 1  ;;  %v431_v62 = vshll.u32 %v2391_v50, 16  ;;  %v2434_v42 = vld [vmem:[%s2348_s11 + $0xc] sm:$0xff]  }
  0x3b   : > { %v768_v57 = vrot.slane %v2005_v53, 1  ;;  %v407_v58 = vshll.u32 %v368_v52, 16  ;;  %v428_v61 = vrot.slane %v426_v51, 1  ;;  %v643_v63 = vsel %vm374_vm1, %v638_v46, %v642_v48  ;;  %v2010_v51 = vld [vmem:[%s2348_s11 + $0x3c] sm:$0xe] }
  0x3c   : > { %v618_v3 = vunpack.c.l.b16 %v1619_v55  ;;  %v899_v7 = vsel %vm374_vm1, %v2398_v59, %v898_v60  ;;  %v433_v9 = vrot.slane %v431_v62, 1  ;;  %v1830_v10 = vor.u32 %v1829_v1, %v1828_v0  ;;  %v1655_v62 = vld [vmem:[%s2348_s11 + $0x50] sm:$0x1] }
  0x3d   : > { %v770_v2 = vsel %vm511_vm0, %v768_v57, %v769_v54  ;;  %v409_v6 = vrot.slane %v407_v58, 1  ;;  %v2413_v8 = vor.u32 %v428_v61, %v424_v56  ;;  %v659_v13 = vshll.u32 %v2384_v43, 16 }
  0x3e   : > { %471 = vrot.lane.b32.xlu0 %v386_v45, %s2909_s29  ;;  %792 = vrot.lane.b32.xlu2 %v770_v2, %s2907_s8  ;;  %v626_v12 = vpack.c.b16 %v618_v3, %v618_v3  ;;  %v518_v18 = vrot.slane %v1830_v10, 1  ;;  %v519_v19 = vrot.slane %v368_v52, 1  ;;  %v657_v20 = vshrl.u32 %v2384_v43, 16  ;;  %v2437_v45 = vld [vmem:[%s2348_s11 + $0xc] sm:$0xf0]  ;;  %v2457_v2 = vld [vmem:[%s2348_s11 + $0x48] sm:$0xff]  }
  0x3f   : > { %v410_v15 = vsel %vm374_vm1, %v2398_v59, %v409_v6  ;;  %v434_v17 = vsel %vm374_vm1, %v2413_v8, %v433_v9  ;;  %v661_v21 = vrot.slane %v659_v13, 1  ;;  %v620_v25 = vunpack.c.l.b16 %v1621_v14  ;;  %v223_v52 = vld [vmem:[%s2348_s11 + $0x14] sm:$0x1] }
  0x40   : > { %728 = vrot.lane.b32.xlu1 %v643_v63, %s2197_s9  ;;  %v664_v22 = vshll.u32 %v626_v12, 16  ;;  %v520_v26 = vsel %vm511_vm0, %v518_v18, %v519_v19  ;;  %v1833_v27 = vor.u32 %v1832_v24, %v1831_v23  ;;  %v683_v31 = vshll.u32 %v1609_v4, 16  ;;  %v1852_v6 = vld [vmem:[%s2348_s11 + $0x30] sm:$0xf0]  ;;  %v2013_v18 = vld [vmem:[%s2348_s11 + $0xc] sm:$0xe] }
  0x41   : > { %v662_v28 = vor.u32 %v661_v21, %v657_v20  ;;  %v628_v30 = vpack.c.b16 %v620_v25, %v620_v25  ;;  %v525_v35 = vrot.slane %v2391_v50, 1  ;;  %v874_v36 = vunpack.c.l.b16 %v1653_v33  ;;  %v1855_v19 = vld [vmem:[%s2348_s11 + $0x48] sm:$0xf0]  ;;  %v1856_v20 = vld [vmem:[%s2348_s11 + $0x48] sm:$0xe] }
  0x42   : > { %v666_v29 = vrot.slane %v664_v22, 1  ;;  %v524_v34 = vrot.slane %v1833_v27, 1  ;;  %v681_v38 = vshrl.u32 %v1609_v4, 16  ;;  %v685_v39 = vrot.slane %v683_v31, 1  ;;  %v228_v21 = vld [vmem:[%s2348_s11 + $0x50] sm:$0x1] }
  0x43   : > { %v688_v41 = vshll.u32 %v628_v30, 16  ;;  %v2008_v47 = vor.u32 %v2007_v32, %v2387_v44  ;;  %v882_v50 = vpack.c.b16 %v874_v36, %v874_v36  ;;  %v775_v54 = vrot.slane %v626_v12, 1  ;;  %v1834_v36 = vld [vmem:[%s2348_s11 + $0x48] sm:$0xf0] }
  0x44   : > { %v667_v37 = vsel %vm374_vm1, %v662_v28, %v666_v29  ;;  %v526_v46 = vsel %vm511_vm0, %v524_v34, %v525_v35  ;;  %v686_v48 = vor.u32 %v685_v39, %v681_v38  ;;  %v359_v56 = vunpack.c.l.b16 %v223_v52  ;;  %v1618_v39 = vld [vmem:[%s2348_s11 + $0x20] sm:$0x1]  ;;  %v2015_v52 = vld [vmem:[%s2348_s11 + $0x54] sm:$0xf0] }
  0x45   : > { %v690_v49 = vrot.slane %v688_v41, 1  ;;  %v774_v53 = vrot.slane %v2008_v47, 1  ;;  %v2011_v57 = vor.u32 %v2010_v51, %v2408_v5  ;;  %v390_v61 = vshll.u32 %v2434_v42, 16  ;;  %v1613_v51 = vld [vmem:[%s2348_s11 + $0x54] sm:$0xff]  }
  0x46   : > { %984 = vrot.lane.b32.xlu0 %v899_v7, %s2198_s30  ;;  %475 = vrot.lane.b32.xlu2 %v410_v15, %s2909_s29  ;;  %v367_v60 = vpack.c.b16 %v359_v56, %v359_v56  ;;  %v781_v0 = vrot.slane %v628_v30, 1  ;;  %v388_v1 = vshrl.u32 %v2434_v42, 16  ;;  %v1853_v7 = vld [vmem:[%s2348_s11 + $0x30] sm:$0xe]  ;;  %v876_v9 = vunpack.c.l.b16 %v1655_v62  ;;  %v1837_v56 = vld [vmem:[%s2348_s11 + $0x18] sm:$0xf0] }
  0x47   : > { %v691_v55 = vsel %vm374_vm1, %v686_v48, %v690_v49  ;;  %v776_v44 = vsel %vm511_vm0, %v774_v53, %v775_v54  ;;  %v780_v63 = vrot.slane %v2011_v57, 1  ;;  %v939_v10 = vshll.u32 %v2457_v2, 16 }
  0x48   : > { %479 = vrot.lane.b32.xlu1 %v434_v17, %s2909_s29  ;;  %v395_v5 = vshll.u32 %v367_v60, 16  ;;  %v1854_v13 = vor.u32 %v1853_v7, %v1852_v6  ;;  %v884_v17 = vpack.c.b16 %v876_v9, %v876_v9  ;;  %v937_v22 = vshrl.u32 %v2457_v2, 16  ;;  %v1724_v7 = vld [vmem:[%s2925_s1 + $0x38] sm:$0xff] }
  0x49   : > { %v782_v12 = vsel %vm511_vm0, %v780_v63, %v781_v0  ;;  %v941_v23 = vrot.slane %v939_v10, 1  ;;  %v1857_v28 = vor.u32 %v1856_v20, %v1855_v19  ;;  %v364_v29 = vunpack.c.l.b16 %v228_v21  ;;  %1282 = vmatpush.bf16.msra.mxu0 %v1724_v7  ;;  %1868 = vmatpush.bf16.msra.mxu1 %v1724_v7  ;;  %v1723_v19 = vld [vmem:[%s2925_s1 + $0x30] sm:$0xff] }
  0x4a   : > { %v397_v15 = vrot.slane %v395_v5, 1  ;;  %v944_v24 = vshll.u32 %v884_v17, 16  ;;  %v1030_v25 = vrot.slane %v1854_v13, 1  ;;  %v2014_v33 = vor.u32 %v2013_v18, %v2437_v45  ;;  %v1652_v13 = vld [vmem:[%s2348_s11 + $0x2c] sm:$0x1]  ;;  %1869 = vmatpush.bf16.msra.mxu2 %v1724_v7  ;;  %1870 = vmatpush.bf16.msra.mxu3 %v1724_v7 }
  0x4b   : > { %v2477_v30 = vor.u32 %v941_v23, %v937_v22  ;;  %v1036_v34 = vrot.slane %v1857_v28, 1  ;;  %v1037_v35 = vrot.slane %v884_v17, 1  ;;  %v372_v38 = vpack.c.b16 %v364_v29, %v364_v29  ;;  %v2523_v23 = vld [vmem:[%s2348_s11 + $0x24] sm:$0xff]  }
  0x4c   : > { %v946_v31 = vrot.slane %v944_v24, 1  ;;  %v515_v47 = vrot.slane %v2014_v33, 1  ;;  %v516_v48 = vrot.slane %v367_v60, 1  ;;  %v707_v5 = vshll.u32 %v1613_v51, 16  ;;  %v2526_v24 = vld [vmem:[%s2348_s11 + $0x24] sm:$0xf0] }
  0x4d   : > { %v1038_v49 = vsel %vm511_vm0, %v1036_v34, %v1037_v35  ;;  %v873_v22 = vunpack.c.l.b16 %v1652_v13  ;;  %1283 = vmatpush.bf16.msra.mxu0 %v1723_v19  ;;  %1871 = vmatpush.bf16.msra.mxu1 %v1723_v19  ;;  %v1657_v33 = vld [vmem:[%s2348_s11 + $0x68] sm:$0x1] }
  0x4e   : > { %540 = vrot.lane.b32.xlu0 %v520_v26, %s2193_s24  ;;  %596 = vrot.lane.b32.xlu2 %v2384_v43, %s2192_s23  ;;  %v920_v43 = vshll.u32 %v882_v50, 16  ;;  %v1031_v26 = vrot.slane %v882_v50, 1  ;;  %v947_v41 = vsel %vm374_vm1, %v2477_v30, %v946_v31  ;;  %v617_v50 = vunpack.c.l.b16 %v1618_v39 }
  0x4f   : > { %v517_v54 = vsel %vm511_vm0, %v515_v47, %v516_v48  ;;  %v709_v17 = vrot.slane %v707_v5, 1  ;;  %1872 = vmatpush.bf16.msra.mxu2 %v1723_v19  ;;  %1873 = vmatpush.bf16.msra.mxu3 %v1723_v19  ;;  %v881_v31 = vpack.c.b16 %v873_v22, %v873_v22  ;;  %v2022_v47 = vld [vmem:[%s2348_s11 + $0x24] sm:$0xe]  ;;  %v878_v48 = vunpack.c.l.b16 %v1657_v33 }
  0x50   : > { %732 = vrot.lane.b32.xlu1 %v667_v37, %s2197_s9  ;;  %v922_v58 = vrot.slane %v920_v43, 1  ;;  %v1032_v32 = vsel %vm511_vm0, %v1030_v25, %v1031_v26  ;;  %v1835_v37 = vld [vmem:[%s2348_s11 + $0x48] sm:$0xe]  ;;  %v531_v43 = vrot.slane %v372_v38, 1  ;;  %v625_v57 = vpack.c.b16 %v617_v50, %v617_v50 }
  0x51   : > { %v1836_v45 = vor.u32 %v1835_v37, %v1834_v36  ;;  %v908_v37 = vshll.u32 %v881_v31, 16 }
  0x52   : > { %v923_v3 = vsel %vm374_vm1, %v2413_v8, %v922_v58  ;;  %v1623_v58 = vld [vmem:[%s2348_s11 + $0x5c] sm:$0x1]  ;;  %v772_v10 = vrot.slane %v625_v57, 1 }
  0x53   : > { %v622_v0 = vunpack.c.l.b16 %v1623_v58  ;;  %v910_v50 = vrot.slane %v908_v37, 1  ;;  %v1622_v37 = vld [vmem:[%s2348_s11 + $0x50] sm:$0x1] }
  0x56   : > { %544 = vrot.lane.b32.xlu0 %v526_v46, %s2193_s24  ;;  %600 = vrot.lane.b32.xlu2 %v1609_v4, %s2192_s23  ;;  %v392_v4 = vrot.slane %v390_v61, 1  ;;  %v455_v46 = vshll.u32 %v372_v38, 16  ;;  %v652_v61 = vshll.u32 %v625_v57, 16  ;;  %v1721_v38 = vld [vmem:[%s2925_s1 + $0x20] sm:$0xff]  ;;  %v2562_v57 = vpack.c.b16 %v878_v48, %v878_v48 }
  0x57   : > { %v621_v48 = vunpack.c.l.b16 %v1622_v37 }
  0x58   : > { %736 = vrot.lane.b32.xlu1 %v691_v55, %s2197_s9  ;;  %v393_v14 = vor.u32 %v392_v4, %v388_v1  ;;  %v457_v53 = vrot.slane %v455_v46, 1  ;;  %v530_v55 = vrot.slane %v1836_v45, 1  ;;  %v2016_v1 = vld [vmem:[%s2348_s11 + $0x54] sm:$0xe]  ;;  %v2506_v4 = vld [vmem:[%s2348_s11 + $0x24] sm:$0xf0] }
  0x59   : > { %v654_v6 = vrot.slane %v652_v61, 1  ;;  %v2017_v21 = vor.u32 %v2016_v1, %v2015_v52  ;;  %v2548_v45 = vld [vmem:[%s2348_s11 + $0x60] sm:$0xff]   ;;  %v414_v52 = vshll.u32 %v2523_v23, 16  ;;  %v2023_v1 = vor.u32 %v2022_v47, %v2526_v24 }
  0x5a   : > { %v398_v27 = vsel %vm374_vm1, %v393_v14, %v397_v15  ;;  %v458_v60 = vsel %vm374_vm1, %v2477_v30, %v457_v53  ;;  %v532_v63 = vsel %vm511_vm0, %v530_v55, %v531_v43  ;;  %v705_v15 = vshrl.u32 %v1613_v51, 16  ;;  %v2556_v43 = vld [vmem:[%s2348_s11 + $0x3c] sm:$0xff]  }
  0x5b   : > { %v655_v14 = vsel %vm374_vm1, %v2398_v59, %v654_v6  ;;  %v786_v28 = vrot.slane %v2017_v21, 1  ;;  %v416_v61 = vrot.slane %v414_v52, 1  ;;  %v968_v7 = vshll.u32 %v2562_v57, 16  ;;  %v1717_v24 = vld [vmem:[%s2925_s1] sm:$0xff] }
  0x5c   : > { %v710_v25 = vor.u32 %v709_v17, %v705_v15  ;;  %v1859_v15 = vld [vmem:[%s2348_s11 + $0x60] sm:$0xe]  ;;  %v521_v17 = vrot.slane %v2023_v1, 1 }
  0x5e   : > { %796 = vrot.lane.b32.xlu0 %v776_v44, %s2907_s8  ;;  %852 = vrot.lane.b32.xlu2 %v2380_v40, %s2191_s5  ;;  %v1838_v44 = vld [vmem:[%s2348_s11 + $0x18] sm:$0xe] }
  0x5f   : > { %v1839_v62 = vor.u32 %v1838_v44, %v1837_v56  ;;  %v2559_v56 = vld [vmem:[%s2348_s11 + $0x3c] sm:$0xf0]  ;;  %v963_v44 = vshll.u32 %v2548_v45, 16 }
  0x60   : > { %988 = vrot.lane.b32.xlu1 %v923_v3, %s2198_s30  ;;  %v2503_v3 = vld [vmem:[%s2348_s11 + $0x24] sm:$0xff]  }
  0x61   : > { %v771_v9 = vrot.slane %v1839_v62, 1  ;;  %v903_v59 = vshll.u32 %v2503_v3, 16  ;;  %v901_v35 = vshrl.u32 %v2503_v3, 16  ;;  %v965_v6 = vrot.slane %v963_v44, 1  ;;  %v2618_v44 = vld [vmem:[%s2348_s11 + $0x3c] sm:$0xff]  }
  0x63   : > { %v773_v20 = vsel %vm511_vm0, %v771_v9, %v772_v10  ;;  %v905_v36 = vrot.slane %v903_v59, 1  ;;  %v438_v59 = vshll.u32 %v2556_v43, 16 }
  0x65   : > { %v440_v33 = vrot.slane %v438_v59, 1 }
  0x66   : > { %800 = vrot.lane.b32.xlu0 %v782_v12, %s2907_s8  ;;  %856 = vrot.lane.b32.xlu2 %v2457_v2, %s2191_s5  ;;  %v630_v12 = vpack.c.b16 %v622_v0, %v622_v0 }
  0x68   : > { %473 = vrot.lane.b32.xlu1 %v398_v27, %s2909_s29  ;;  %v712_v18 = vshll.u32 %v630_v12, 16  ;;  %v1722_v27 = vld [vmem:[%s2925_s1 + $0x28] sm:$0xff]  ;;  %v787_v29 = vrot.slane %v630_v12, 1 }
  0x69   : > { %1284 = vmatpush.bf16.msra.mxu0 %v1722_v27  ;;  %1874 = vmatpush.bf16.msra.mxu1 %v1722_v27  ;;  %v1718_v12 = vld [vmem:[%s2925_s1 + $0x8] sm:$0xff] }
  0x6a   : > { %v714_v26 = vrot.slane %v712_v18, 1  ;;  %1875 = vmatpush.bf16.msra.mxu2 %v1722_v27  ;;  %1876 = vmatpush.bf16.msra.mxu3 %v1722_v27  ;;  %v788_v39 = vsel %vm511_vm0, %v786_v28, %v787_v29  ;;  %v1620_v27 = vld [vmem:[%s2348_s11 + $0x38] sm:$0x1] }
  0x6c   : > { %v715_v34 = vsel %vm374_vm1, %v710_v25, %v714_v26  ;;  %v2025_v25 = vld [vmem:[%s2348_s11 + $0x3c] sm:$0xe] }
  0x6d   : > { %1285 = vmatpush.bf16.msra.mxu0 %v1721_v38  ;;  %1877 = vmatpush.bf16.msra.mxu1 %v1721_v38 }
  0x6e   : > { %1052 = vrot.lane.b32.xlu0 %v1032_v32, %s2905_s28  ;;  %992 = vrot.lane.b32.xlu2 %v947_v41, %s2198_s30  ;;  %v225_v32 = vld [vmem:[%s2348_s11 + $0x2c] sm:$0x1] }
  0x6f   : > { %v361_v46 = vunpack.c.l.b16 %v225_v32  ;;  %1878 = vmatpush.bf16.msra.mxu2 %v1721_v38  ;;  %1879 = vmatpush.bf16.msra.mxu3 %v1721_v38  ;;  %v436_v32 = vshrl.u32 %v2556_v43, 16 }
  0x70   : > { %1056 = vrot.lane.b32.xlu1 %v1038_v49, %s2905_s28  ;;  %v906_v49 = vor.u32 %v905_v36, %v901_v35  ;;  %v619_v36 = vunpack.c.l.b16 %v1620_v27  ;;  %s2927_s28 = smov 20   ;;  %v2655_v27 = vld [vmem:[%s2348_s11 + $0x54] sm:$0xff]  }
  0x71   : > { %v369_v55 = vpack.c.b16 %v361_v46, %v361_v46 }
  0x72   : > { %v911_v58 = vsel %vm374_vm1, %v906_v49, %v910_v50  ;;  %v627_v47 = vpack.c.b16 %v619_v36, %v619_v36 }
  0x73   : > { %v419_v62 = vshll.u32 %v369_v55, 16  ;;  %v522_v18 = vrot.slane %v369_v55, 1  ;;  %v1841_v55 = vld [vmem:[%s2348_s11 + $0x30] sm:$0xe] }
  0x74   : > { %v676_v52 = vshll.u32 %v627_v47, 16 }
  0x75   : > { %v421_v10 = vrot.slane %v419_v62, 1  ;;  %v523_v26 = vsel %vm511_vm0, %v521_v17, %v522_v18 }
  0x76   : > { %538 = vrot.lane.b32.xlu0 %v517_v54, %s2193_s24  ;;  %483 = vrot.lane.b32.xlu2 %v458_v60, %s2909_s29  ;;  %v1028_v54 = vrot.slane %v881_v31, 1  ;;  %v412_v60 = vshrl.u32 %v2523_v23, 16  ;;  %v1043_v31 = vrot.slane %v2562_v57, 1  ;;  %v2621_v57 = vld [vmem:[%s2348_s11 + $0x3c] sm:$0xf0]  ;;  %v678_v62 = vrot.slane %v676_v52, 1 }
  0x78   : > { %548 = vrot.lane.b32.xlu1 %v532_v63, %s2193_s24  ;;  %v1719_v63 = vld [vmem:[%s2925_s1 + $0x10] sm:$0xff]  ;;  %v417_v9 = vor.u32 %v416_v61, %v412_v60 }
  0x7a   : > { %v422_v21 = vsel %vm374_vm1, %v417_v9, %v421_v10  ;;  %v1843_v9 = vld [vmem:[%s2348_s11 + $0x48] sm:$0xf0]  ;;  %v1844_v10 = vld [vmem:[%s2348_s11 + $0x48] sm:$0xe] }
  0x7b   : > { %v1845_v18 = vor.u32 %v1844_v10, %v1843_v9 }
  0x7e   : > { %594 = vrot.lane.b32.xlu0 %v2366_v16, %s2192_s23  ;;  %v2019_v16 = vld [vmem:[%s2348_s11 + $0x24] sm:$0xe]  ;;  %730 = vrot.lane.b32.xlu2 %v655_v14, %s2197_s9 }
  0x7f   : > { %v2020_v41 = vor.u32 %v2019_v16, %v2506_v4  ;;  %v227_v4 = vld [vmem:[%s2348_s11 + $0x44] sm:$0x1] }
  0x80   : > { %794 = vrot.lane.b32.xlu1 %v773_v20, %s2907_s8  ;;  %v363_v13 = vunpack.c.l.b16 %v227_v4  ;;  %v1858_v14 = vld [vmem:[%s2348_s11 + $0x60] sm:$0xf0]  ;;  %v970_v20 = vrot.slane %v968_v7, 1  ;;  %v2627_v4 = vld [vmem:[%s2348_s11 + $0x54] sm:$0xff]   ;;  %v778_v7 = vrot.slane %v627_v47, 1 }
  0x81   : > { %v1027_v53 = vrot.slane %v2020_v41, 1  ;;  %v1860_v22 = vor.u32 %v1859_v15, %v1858_v14  ;;  %v441_v41 = vor.u32 %v440_v33, %v436_v32 }
  0x82   : > { %v371_v16 = vpack.c.b16 %v363_v13, %v363_v13 }
  0x83   : > { %v1029_v0 = vsel %vm511_vm0, %v1027_v53, %v1028_v54  ;;  %v1042_v29 = vrot.slane %v1860_v22, 1  ;;  %v1840_v54 = vld [vmem:[%s2348_s11 + $0x30] sm:$0xf0] }
  0x84   : > { %v528_v50 = vrot.slane %v371_v16, 1  ;;  %v1842_v61 = vor.u32 %v1841_v55, %v1840_v54 }
  0x85   : > { %v1044_v38 = vsel %vm511_vm0, %v1042_v29, %v1043_v31  ;;  %v783_v29 = vrot.slane %v1845_v18, 1 }
  0x86   : > { %604 = vrot.lane.b32.xlu0 %v1613_v51, %s2192_s23  ;;  %740 = vrot.lane.b32.xlu2 %v715_v34, %s2197_s9  ;;  %v1720_v51 = vld [vmem:[%s2925_s1 + $0x18] sm:$0xff]  ;;  %v443_v34 = vshll.u32 %v371_v16, 16 }
  0x87   : > { %1286 = vmatpush.bf16.msra.mxu0 %v1720_v51  ;;  %1880 = vmatpush.bf16.msra.mxu1 %v1720_v51  ;;  %v1656_v16 = vld [vmem:[%s2348_s11 + $0x5c] sm:$0x1] }
  0x88   : > { %804 = vrot.lane.b32.xlu1 %v788_v39, %s2907_s8  ;;  %1881 = vmatpush.bf16.msra.mxu2 %v1720_v51  ;;  %s2926_s8 = smov 32   ;;  %v2026_v39 = vor.u32 %v2025_v25, %v2559_v56  ;;  %v445_v46 = vrot.slane %v443_v34, 1  ;;  %v877_v36 = vunpack.c.l.b16 %v1656_v16  ;;  %v2036_v16 = vld [vmem:[%s2348_s11 + $0x6c] sm:$0xf0] }
  0x89   : > { %1882 = vmatpush.bf16.msra.mxu3 %v1720_v51 }
  0x8a   : > { %v527_v49 = vrot.slane %v2026_v39, 1  ;;  %v446_v51 = vsel %vm374_vm1, %v441_v41, %v445_v46  ;;  %v951_v39 = vshll.u32 %v2627_v4, 16  ;;  %v229_v41 = vld [vmem:[%s2348_s11 + $0x5c] sm:$0x1]  ;;  %v885_v52 = vpack.c.b16 %v877_v36, %v877_v36 }
  0x8b   : > { %1287 = vmatpush.bf16.msra.mxu0 %v1719_v63  ;;  %1883 = vmatpush.bf16.msra.mxu1 %v1719_v63 }
  0x8c   : > { %v2575_v5 = vpop.permute.xlu2 %848  ;;  %1884 = vmatpush.bf16.msra.mxu2 %v1719_v63  ;;  %v529_v60 = vsel %vm511_vm0, %v527_v49, %v528_v50 }
  0x8d   : > { %1885 = vmatpush.bf16.msra.mxu3 %v1719_v63 }
  0x8e   : > { %850 = vrot.lane.b32.xlu0 %v2503_v3, %s2191_s5  ;;  %v961_v3 = vshrl.u32 %v2548_v45, 16  ;;  %986 = vrot.lane.b32.xlu2 %v911_v58, %s2198_s30  ;;  %v629_v58 = vpack.c.b16 %v621_v48, %v621_v48 }
  0x8f   : > { %1288 = vmatpush.bf16.msra.mxu0 %v1718_v12  ;;  %1886 = vmatpush.bf16.msra.mxu1 %v1718_v12 }
  0x90   : > { %1050 = vrot.lane.b32.xlu1 %v1029_v0, %s2926_s8  ;;  %1887 = vmatpush.bf16.msra.mxu2 %v1718_v12  ;;  %v2585_v19 = vor.u32 %v965_v6, %v961_v3  ;;  %v1654_v0 = vld [vmem:[%s2348_s11 + $0x44] sm:$0x1]  ;;  %v700_v1 = vshll.u32 %v629_v58, 16  ;;  %v2630_v3 = vld [vmem:[%s2348_s11 + $0x54] sm:$0xf0]  ;;  %v777_v6 = vrot.slane %v1842_v61, 1 }
  0x91   : > { %1888 = vmatpush.bf16.msra.mxu3 %v1718_v12  ;;  %v679_v12 = vsel %vm374_vm1, %v2413_v8, %v678_v62  ;;  %v875_v14 = vunpack.c.l.b16 %v1654_v0  ;;  %v2028_v8 = vld [vmem:[%s2348_s11 + $0x3c] sm:$0xe]  ;;  %v784_v32 = vrot.slane %v629_v58, 1  ;;  %v462_v61 = vshll.u32 %v2655_v27, 16 }
  0x92   : > { %v971_v28 = vsel %vm374_vm1, %v2585_v19, %v970_v20  ;;  %v702_v17 = vrot.slane %v700_v1, 1  ;;  %v779_v20 = vsel %vm511_vm0, %v777_v6, %v778_v7  ;;  %v2029_v48 = vor.u32 %v2028_v8, %v2621_v57  ;;  %v2034_v7 = vld [vmem:[%s2348_s11 + $0x54] sm:$0xe] }
  0x93   : > { %1289 = vmatpush.bf16.msra.mxu0 %v1717_v24  ;;  %1889 = vmatpush.bf16.msra.mxu1 %v1717_v24  ;;  %v2644_v22 = vpack.c.b16 %v875_v14, %v875_v14  ;;  %v785_v47 = vsel %vm511_vm0, %v783_v29, %v784_v32  ;;  %v949_v62 = vshrl.u32 %v2627_v4, 16  ;;  %v956_v0 = vshll.u32 %v885_v52, 16 }
  0x94   : > { %1890 = vmatpush.bf16.msra.mxu2 %v1717_v24  ;;  %v703_v25 = vsel %vm374_vm1, %v2477_v30, %v702_v17  ;;  %v1040_v6 = vrot.slane %v885_v52, 1 }
  0x95   : > { %1891 = vmatpush.bf16.msra.mxu3 %v1717_v24  ;;  %v932_v30 = vshll.u32 %v2644_v22, 16 }
  0x96   : > { %860 = vrot.lane.b32.xlu0 %v2548_v45, %s2191_s5  ;;  %477 = vrot.lane.b32.xlu2 %v422_v21, %s2909_s29  ;;  %v927_v21 = vshll.u32 %v2618_v44, 16 }
  0x98   : > { %542 = vrot.lane.b32.xlu1 %v523_v26, %s2193_s24  ;;  %v2603_v35 = vpop.permute.xlu2 %792  ;;  %v2031_v26 = vld [vmem:[%s2348_s11 + $0x54] sm:$0xe]  ;;  %v929_v33 = vrot.slane %v927_v21, 1 }
  0x9e   : > { %996 = vrot.lane.b32.xlu0 %v971_v28, %s2198_s30  ;;  %1060 = vrot.lane.b32.xlu2 %v1044_v38, %s2926_s8  ;;  %v2658_v28 = vld [vmem:[%s2348_s11 + $0x54] sm:$0xf0] }
  0x9f   : > { %v2035_v29 = vor.u32 %v2034_v7, %v2658_v28 }
  0xa0   : > { %598 = vrot.lane.b32.xlu1 %v2380_v40, %s2192_s23  ;;  %v2613_v53 = vpop.permute.xlu2 %475 }
  0xa1   : > { %v593_v56 = vpop.permute.xlu1 %592 }
  0xa6   : > { %481 = vrot.lane.b32.xlu0 %v446_v51, %s2909_s29  ;;  %546 = vrot.lane.b32.xlu2 %v529_v60, %s2193_s24  ;;  %v934_v51 = vrot.slane %v932_v30, 1  ;;  %v1034_v60 = vrot.slane %v2644_v22, 1 }
  0xa8   : > { %v537_v63 = vpop.permute.xlu0 %536  ;;  %602 = vrot.lane.b32.xlu1 %v2457_v2, %s2192_s23  ;;  %v2639_v13 = vpop.permute.xlu2 %596 }
  0xaa   : > { %v1049_v15 = vpop.permute.xlu1 %1048 }
  0xae   : > { %734 = vrot.lane.b32.xlu0 %v679_v12, %s2197_s9  ;;  %798 = vrot.lane.b32.xlu2 %v779_v20, %s2927_s28  ;;  %v1624_v12 = vld [vmem:[%s2348_s11 + $0x68] sm:$0x1]  ;;  %v958_v20 = vrot.slane %v956_v0, 1  ;;  %v2002_v0 = vld [vmem:[%s2348_s11 + $0x18] sm:$0xff]  }
  0xaf   : > { %v623_v8 = vunpack.c.l.b16 %v1624_v12 }
  0xb0   : > { %v472_v24 = vpop.permute.xlu0 %471  ;;  %854 = vrot.lane.b32.xlu1 %v2618_v44, %s2191_s5  ;;  %v2665_v34 = vpop.permute.xlu2 %600 }
  0xb1   : > { %v1066_v59 = vsel %vm1064_vm2, %v2361_v11, %v472_v24  ;;  %v925_v11 = vshrl.u32 %v2618_v44, 16  ;;  %v365_v44 = vunpack.c.l.b16 %v229_v41  ;;  %v1649_v24 = vld [vmem:[%s2348_s11 + $0x6c] sm:$0xff]   ;;  %v631_v32 = vpack.c.b16 %v623_v8, %v623_v8  ;;  %v1846_v41 = vld [vmem:[%s2348_s11 + $0x60] sm:$0xf0] }
  0xb2   : > { %v1083_v31 = vsel %vm1081_vm3, %v1066_v59, %v537_v63  ;;  %v729_v37 = vpop.permute.xlu1 %728  ;;  %v953_v63 = vrot.slane %v951_v39, 1  ;;  %v975_v28 = vshll.u32 %v1649_v24, 16 }
  0xb3   : > { %v1100_v38 = vsel %vm1098_vm4, %v1083_v31, %v593_v56  ;;  %v930_v50 = vor.u32 %v929_v33, %v925_v11  ;;  %v2032_v56 = vor.u32 %v2031_v26, %v2630_v3  ;;  %v373_v9 = vpack.c.b16 %v365_v44, %v365_v44  ;;  %v1658_v33 = vld [vmem:[%s2348_s11 + $0x74] sm:$0x1] }
  0xb4   : > { %v1117_v46 = vsel %vm1115_vm5, %v1100_v38, %v729_v37  ;;  %v954_v18 = vor.u32 %v953_v63, %v949_v62  ;;  %v724_v36 = vshll.u32 %v631_v32, 16  ;;  %v533_v37 = vrot.slane %v2035_v29, 1 }
  0xb5   : > { %v1134_v49 = vsel %vm1132_vm6, %v1117_v46, %v2603_v35  ;;  %v1033_v35 = vrot.slane %v2029_v48, 1  ;;  %v1039_v3 = vrot.slane %v2032_v56, 1  ;;  %v467_v17 = vshll.u32 %v373_v9, 16  ;;  %v1847_v46 = vld [vmem:[%s2348_s11 + $0x60] sm:$0xe] }
  0xb6   : > { %738 = vrot.lane.b32.xlu0 %v703_v25, %s2197_s9  ;;  %v1151_v54 = vsel %vm1149_vm7, %v1134_v49, %v2575_v5  ;;  %802 = vrot.lane.b32.xlu2 %v785_v47, %s2927_s28  ;;  %v935_v5 = vsel %vm374_vm1, %v930_v50, %v934_v51  ;;  %v959_v26 = vsel %vm374_vm1, %v954_v18, %v958_v20  ;;  %v534_v38 = vrot.slane %v373_v9, 1  ;;  %v2037_v51 = vld [vmem:[%s2348_s11 + $0x6c] sm:$0xe]  ;;  %s183_s11 = sand.u32 1, %s2165_s16  }
  0xb7   : > { %v1035_v14 = vsel %vm511_vm0, %v1033_v35, %v1034_v60  ;;  %v1041_v22 = vsel %vm511_vm0, %v1039_v3, %v1040_v6  ;;  %v469_v25 = vrot.slane %v467_v17, 1  ;;  %v879_v47 = vunpack.c.l.b16 %v1658_v33 }
  0xb8   : > { %v985_v55 = vpop.permute.xlu0 %984  ;;  %858 = vrot.lane.b32.xlu1 %v2627_v4, %s2191_s5  ;;  %v2689_v1 = vpop.permute.xlu2 %852  ;;  %v464_v4 = vrot.slane %v462_v61, 1  ;;  %v726_v48 = vrot.slane %v724_v36, 1  ;;  %v535_v49 = vsel %vm511_vm0, %v533_v37, %v534_v38  ;;  %v1848_v50 = vor.u32 %v1847_v46, %v1846_v41 }
  0xb9   : > { %v1168_v58 = vsel %vm1166_vm8, %v1151_v54, %v985_v55  ;;  %v887_v52 = vpack.c.b16 %v879_v47, %v879_v47  ;;  %v973_v44 = vshrl.u32 %v1649_v24, 16  ;;  %v790_v60 = vrot.slane %v631_v32, 1 }
  0xba   : > { %v1185_v57 = vsel %vm1183_vm9, %v1168_v58, %v1049_v15  ;;  %v2692_v10 = vpop.permute.xlu1 %479  ;;  %v460_v15 = vshrl.u32 %v2655_v27, 16  ;;  %v727_v56 = vsel %vm374_vm1, %v2585_v19, %v726_v48  ;;  %v977_v58 = vrot.slane %v975_v28, 1 }
  0xbb   : > { %1699 = vmatmul.msk.bf16.vlgmr.msra.gmra.mxu0 %vm1200_vm10, %v1185_v57  ;;  %v980_v57 = vshll.u32 %v887_v52, 16  ;;  %v789_v35 = vrot.slane %v1848_v50, 1  ;;  %v2038_v63 = vor.u32 %v2037_v51, %v2036_v16  ;;  %v1070_v3 = vsel %vm1064_vm2, %v2002_v0, %v2613_v53 }
  0xbc   : > { %v465_v59 = vor.u32 %v464_v4, %v460_v15  ;;  %v1074_v9 = vsel %vm1064_vm2, %v2380_v40, %v2692_v10  ;;  %v1046_v15 = vrot.slane %v887_v52, 1 }
  0xbd   : > { %v791_v62 = vsel %vm511_vm0, %v789_v35, %v790_v60 }
  0xbe   : > { %990 = vrot.lane.b32.xlu0 %v935_v5, %s2198_s30  ;;  %1054 = vrot.lane.b32.xlu2 %v1035_v14, %s2926_s8  ;;  %v470_v30 = vsel %vm374_vm1, %v465_v59, %v469_v25  ;;  %v982_v5 = vrot.slane %v980_v57, 1  ;;  %v1045_v14 = vrot.slane %v2038_v63, 1 }
  0xc0   : > { %v541_v21 = vpop.permute.xlu0 %540  ;;  %1058 = vrot.lane.b32.xlu1 %v1041_v22, %s2926_s8  ;;  %v2705_v31 = vpop.permute.xlu2 %856  ;;  %v1047_v20 = vsel %vm511_vm0, %v1045_v14, %v1046_v15 }
  0xc1   : > { %v1087_v12 = vsel %vm1081_vm3, %v1070_v3, %v541_v21 }
  0xc2   : > { %v733_v11 = vpop.permute.xlu1 %732  ;;  %v1104_v53 = vsel %vm1098_vm4, %v1087_v12, %v2639_v13 }
  0xc3   : > { %v1121_v18 = vsel %vm1115_vm5, %v1104_v53, %v733_v11 }
  0xc6   : > { %994 = vrot.lane.b32.xlu0 %v959_v26, %s2198_s30  ;;  %485 = vrot.lane.b32.xlu2 %v470_v30, %s2909_s29 }
  0xc8   : > { %v545_v39 = vpop.permute.xlu0 %544  ;;  %606 = vrot.lane.b32.xlu1 %v2548_v45, %s2192_s23  ;;  %v993_v55 = vpop.permute.xlu2 %992  ;;  %v978_v45 = vor.u32 %v977_v58, %v973_v44 }
  0xc9   : > { %v1091_v17 = vsel %vm1081_vm3, %v1074_v9, %v545_v39 }
  0xca   : > { %v737_v54 = vpop.permute.xlu1 %736  ;;  %v983_v7 = vsel %vm374_vm1, %v978_v45, %v982_v5  ;;  %v1108_v40 = vsel %vm1098_vm4, %v1091_v17, %v2665_v34 }
  0xcb   : > { %v1125_v21 = vsel %vm1115_vm5, %v1108_v40, %v737_v54 }
  0xce   : > { %550 = vrot.lane.b32.xlu0 %v535_v49, %s2193_s24  ;;  %742 = vrot.lane.b32.xlu2 %v727_v56, %s2197_s9  ;;  %s1709_s24 = sshll.u32 %s2177_s19, 1 }
  0xd0   : > { %v797_v61 = vpop.permute.xlu0 %796  ;;  %862 = vrot.lane.b32.xlu1 %v1649_v24, %s2191_s5  ;;  %v484_v6 = vpop.permute.xlu2 %483  ;;  %s1593_s5 = sshll.u32 %s183_s11, 6 }
  0xd1   : > { %v1138_v22 = vsel %vm1132_vm6, %v1121_v18, %v797_v61  ;;  %s2799_s23 = scalar_lea.vmem [#allocation2], %s1593_s5 }
  0xd2   : > { %v989_v19 = vpop.permute.xlu1 %988  ;;  %v1155_v8 = vsel %vm1149_vm7, %v1138_v22, %v2689_v1  ;;  %s1447_s5 = sshll.u32 %s2799_s23, 4  ;;  %s2822_s5 = int_to_ptr.vmem [resolvable:$true] %s1447_s5 }
  0xd3   : > { %v1172_v16 = vsel %vm1166_vm8, %v1155_v8, %v989_v19 }
  0xd6   : > { %806 = vrot.lane.b32.xlu0 %v791_v62, %s2927_s28  ;;  %998 = vrot.lane.b32.xlu2 %v983_v7, %s2198_s30  ;;  %s1428_s30 = scalar_lea.sflag [#allocation3], %s183_s11 }
  0xd8   : > { %v801_v4 = vpop.permute.xlu0 %800  ;;  %v731_v24 = vpop.permute.xlu2 %730 }
  0xd9   : > { %v1142_v13 = vsel %vm1132_vm6, %v1125_v21, %v801_v4 }
  0xda   : > { %v474_v10 = vpop.permute.xlu1 %473  ;;  %v1159_v26 = vsel %vm1149_vm7, %v1142_v13, %v2705_v31 }
  0xdb   : > { %v1176_v34 = vsel %vm1166_vm8, %v1159_v26, %v993_v55  ;;  %v1068_v39 = vsel %vm1064_vm2, %v2434_v42, %v474_v10  ;;  %v1078_v42 = vsel %vm1064_vm2, %v2457_v2, %v484_v6 }
  0xde   : > { %1062 = vrot.lane.b32.xlu0 %v1047_v20, %s2926_s8  ;;  %s1441_s8 = sadd.s32 %s2173_s18, %s1709_s24 }
  0xdf   : > { %s1725_s9 = sshll.u32 %s1441_s8, 6  ;;  %s1712_s8 = sshll.u32 %s2173_s18, 1 }
  0xe0   : > { %v1053_v59 = vpop.permute.xlu0 %1052  ;;  %v741_v11 = vpop.permute.xlu2 %740  ;;  %s1446_s28 = scalar_lea.hbm %s2901_s2, %s1725_s9  ;;  %s1713_s9 = sshll.u32 %s2177_s19, 2 }
  0xe1   : > { %v1189_v25 = vsel %vm1183_vm9, %v1172_v16, %v1053_v59  ;;  %s1449_s29 = sshll.u32 %s1446_s28, 4  ;;  %s1450_s29 = int_to_ptr.hbm [resolvable:$true] %s1449_s29 }
  0xe2   : > { %1701 = vmatmul.msk.bf16.vlgmr.msra.gmra.mxu1 %vm1200_vm10, %v1189_v25  ;;  %v1057_v29 = vpop.permute.xlu1 %1056  ;;  %s2053_s10 = sshra.s32 %s1450_s29, 4  ;;  %s2054_s10 = int_to_ptr.hbm [resolvable:$true] %s2053_s10 }
  0xe3   : > { %v1193_v32 = vsel %vm1183_vm9, %v1176_v34, %v1057_v29  ;;  %s2055_s28 = scalar_lea.hbm %s2054_s10, 64  ;;  %p2060_p9 = scmp.lt.s32.totalorder %s2054_s10, %s2901_s2 }
  0xe4   : > { %1703 = vmatmul.msk.bf16.vlgmr.msra.gmra.mxu2 %vm1200_vm10, %v1193_v32  ;;  %p2056_p2 = scmp.ne.s32.totalorder %s2054_s10, %s2055_s28  ;;  %p2061_p10 = scmp.lt.s32.totalorder %s2059_s26, %s2055_s28 }
  0xe6   : > { %p2057_p6 = pnand %p2056_p2, %p2295_p5  ;;  %p2062_p11 = por %p2061_p10, %p2060_p9 }
  0xe8   : > { %v539_v1 = vpop.permute.xlu0 %538  ;;  %v987_v36 = vpop.permute.xlu2 %986  ;;  %p2058_p8 = pneg %p2057_p6 }
  0xe9   : > { %v1085_v31 = vsel %vm1081_vm3, %v1068_v39, %v539_v1 }
  0xea   : > { %v549_v33 = vpop.permute.xlu1 %548  ;;  %p2063_p12 = pnand %p2062_p11, %p2058_p8 }
  0xeb   : > { %v1095_v44 = vsel %vm1081_vm3, %v1078_v42, %v549_v33 }
  0xf0   : > { %v595_v30 = vpop.permute.xlu0 %594  ;;  %v478_v47 = vpop.permute.xlu2 %477 }
  0xf1   : > { %v1102_v41 = vsel %vm1098_vm4, %v1085_v31, %v595_v30  ;;  %v1072_v12 = vsel %vm1064_vm2, %v2523_v23, %v478_v47 }
  0xf2   : > { %v795_v37 = vpop.permute.xlu1 %794  ;;  %v1119_v28 = vsel %vm1115_vm5, %v1102_v41, %v731_v24 }
  0xf3   : > { %v1136_v49 = vsel %vm1132_vm6, %v1119_v28, %v795_v37 }
  0xf8   : > { %v605_v38 = vpop.permute.xlu0 %604  ;;  %v1061_v55 = vpop.permute.xlu2 %1060 }
  0xf9   : > { %v1112_v58 = vsel %vm1098_vm4, %v1095_v44, %v605_v38 }
  0xfa   : > { %v805_v46 = vpop.permute.xlu1 %804  ;;  %v1129_v35 = vsel %vm1115_vm5, %v1112_v58, %v741_v11 }
  0xfb   : > { %v1146_v60 = vsel %vm1132_vm6, %v1129_v35, %v805_v46 }
 0x100   : > { %v851_v48 = vpop.permute.xlu0 %850  ;;  %v547_v62 = vpop.permute.xlu2 %546 }
 0x101   : > { %v1153_v50 = vsel %vm1149_vm7, %v1136_v49, %v851_v48 }
 0x102   : > { %v1170_v51 = vsel %vm1166_vm8, %v1153_v50, %v987_v36  ;;  %v1051_v52 = vpop.permute.xlu1 %1050 }
 0x103   : > { %v1187_v54 = vsel %vm1183_vm9, %v1170_v51, %v1051_v52 }
 0x104   : > { %1700 = vmatmul.msk.bf16.gmra.mxu0 %vm1200_vm10, %v1187_v54 }
 0x108   : > { %v861_v56 = vpop.permute.xlu0 %860  ;;  %v799_v3 = vpop.permute.xlu2 %798 }
 0x109   : > { %v1163_v61 = vsel %vm1149_vm7, %v1146_v60, %v861_v56 }
 0x10a   : > { %v543_v57 = vpop.permute.xlu1 %542 }
 0x10b   : > { %v1089_v15 = vsel %vm1081_vm3, %v1072_v12, %v543_v57 }
 0x110   : > { %v997_v45 = vpop.permute.xlu0 %996  ;;  %v803_v9 = vpop.permute.xlu2 %802 }
 0x111   : > { %v1180_v5 = vsel %vm1166_vm8, %v1163_v61, %v997_v45 }
 0x112   : > { %v1197_v2 = vsel %vm1183_vm9, %v1180_v5, %v1061_v55  ;;  %v599_v63 = vpop.permute.xlu1 %598 }
 0x113   : > { %1705 = vmatmul.msk.bf16.vlgmr.msra.gmra.mxu3 %vm1200_vm10, %v1197_v2  ;;  %v1106_v4 = vsel %vm1098_vm4, %v1089_v15, %v599_v63 }
 0x118   : > { %v482_v0 = vpop.permute.xlu0 %481  ;;  %v1055_v22 = vpop.permute.xlu2 %1054 }
 0x119   : > { %v1076_v18 = vsel %vm1064_vm2, %v2556_v43, %v482_v0 }
 0x11a   : > { %v603_v19 = vpop.permute.xlu1 %602  ;;  %v1093_v21 = vsel %vm1081_vm3, %v1076_v18, %v547_v62 }
 0x11b   : > { %v1110_v13 = vsel %vm1098_vm4, %v1093_v21, %v603_v19 }
 0x120   : > { %v735_v6 = vpop.permute.xlu0 %734  ;;  %v486_v29 = vpop.permute.xlu2 %485 }
 0x121   : > { %v1123_v53 = vsel %vm1115_vm5, %v1106_v4, %v735_v6  ;;  %v1080_v11 = vsel %vm1064_vm2, %v2655_v27, %v486_v29 }
 0x122   : > { %v855_v7 = vpop.permute.xlu1 %854  ;;  %v1140_v20 = vsel %vm1132_vm6, %v1123_v53, %v799_v3 }
 0x123   : > { %v1157_v40 = vsel %vm1149_vm7, %v1140_v20, %v855_v7 }
 0x128   : > { %v739_v14 = vpop.permute.xlu0 %738  ;;  %v743_v38 = vpop.permute.xlu2 %742 }
 0x129   : > { %v1127_v43 = vsel %vm1115_vm5, %v1110_v13, %v739_v14 }
 0x12a   : > { %v859_v17 = vpop.permute.xlu1 %858  ;;  %v1144_v16 = vsel %vm1132_vm6, %v1127_v43, %v803_v9 }
 0x12b   : > { %v1161_v59 = vsel %vm1149_vm7, %v1144_v16, %v859_v17 }
 0x130   : > { %v991_v10 = vpop.permute.xlu0 %990  ;;  %v999_v28 = vpop.permute.xlu2 %998 }
 0x131   : > { %v1174_v23 = vsel %vm1166_vm8, %v1157_v40, %v991_v10 }
 0x132   : > { %v1191_v8 = vsel %vm1183_vm9, %v1174_v23, %v1055_v22  ;;  %v1059_v24 = vpop.permute.xlu1 %1058 }
 0x133   : > { %1702 = vmatmul.msk.bf16.gmra.mxu1 %vm1200_vm10, %v1191_v8 }
 0x138   : > { %v1291_v25 = vpop.f32.mrf.mxu0  ;;  %v995_v26 = vpop.permute.xlu0 %994 }
 0x139   : > { %v1178_v34 = vsel %vm1166_vm8, %v1161_v59, %v995_v26  ;;  %v1389_v57 = vmul.f32 %v1291_v25, %v1291_v25 }
 0x13a   : > { %v1195_v32 = vsel %vm1183_vm9, %v1178_v34, %v1059_v24  ;;  %v607_v1 = vpop.permute.xlu1 %606 }
 0x13b   : > { %1704 = vmatmul.msk.bf16.gmra.mxu2 %vm1200_vm10, %v1195_v32 }
 0x140   : > { %v1293_v33 = vpop.f32.mrf.mxu0  ;;  %v551_v30 = vpop.permute.xlu0 %550 }
 0x141   : > { %v1777_v36 = vpack.c.bf16 %v1293_v33, %v1291_v25  ;;  %v1097_v37 = vsel %vm1081_vm3, %v1080_v11, %v551_v30  ;;  %v1390_v58 = vmul.f32 %v1293_v33, %v1293_v33  ;;  %v1363_v35 = vadd.f32 %v1293_v33, %v1291_v25 }
 0x142   : > { %v1114_v39 = vsel %vm1098_vm4, %v1097_v37, %v607_v1  ;;  %v863_v27 = vpop.permute.xlu1 %862 }
 0x143   : > { %1778 = vst [vmem:[%s2799_s23] sm:$0xff] %v1777_v36   ;;  %v1131_v41 = vsel %vm1115_vm5, %v1114_v39, %v743_v38  ;;  %v1405_v61 = vadd.f32 %v1390_v58, %v1389_v57 }
 0x148   : > { %v807_v31 = vpop.permute.xlu0 %806 }
 0x149   : > { %v1148_v46 = vsel %vm1132_vm6, %v1131_v41, %v807_v31 }
 0x14a   : > { %v1165_v47 = vsel %vm1149_vm7, %v1148_v46, %v863_v27 }
 0x14b   : > { %v1182_v48 = vsel %vm1166_vm8, %v1165_v47, %v999_v28 }
 0x150   : > { %v1063_v49 = vpop.permute.xlu0 %1062 }
 0x151   : > { %v1199_v50 = vsel %vm1183_vm9, %v1182_v48, %v1063_v49 }
 0x152   : > { %1706 = vmatmul.msk.bf16.gmra.mxu3 %vm1200_vm10, %v1199_v50 }
 0x15f   : > { %v1301_v51 = vpop.f32.mrf.mxu1 }
 0x160   : > { %v1393_v3 = vmul.f32 %v1301_v51, %v1301_v51 }
 0x167   : > { %v1303_v52 = vpop.f32.mrf.mxu1  ;;  %v1311_v42 = vpop.f32.mrf.mxu2 }
 0x168   : > { %v1787_v54 = vpack.c.bf16 %v1303_v52, %v1301_v51  ;;  %v1394_v4 = vmul.f32 %v1303_v52, %v1303_v52  ;;  %v1397_v13 = vmul.f32 %v1311_v42, %v1311_v42 }
 0x16a   : > { %1862 = vst [vmem:[%s2799_s23 + $0x10] sm:$0xff] %v1787_v54  }
 0x16f   : > { %v1313_v55 = vpop.f32.mrf.mxu2 }
 0x170   : > { %v1797_v56 = vpack.c.bf16 %v1313_v55, %v1311_v42  ;;  %v1398_v59 = vmul.f32 %v1313_v55, %v1313_v55 }
 0x172   : > { %1864 = vst [vmem:[%s2799_s23 + $0x20] sm:$0xff] %v1797_v56  }
 0x181   : > { %v1296_v44 = vpop.f32.mrf.mxu0 }
 0x182   : > { %v1391_v60 = vmul.f32 %v1296_v44, %v1296_v44  ;;  %v1364_v45 = vadd.f32 %v1363_v35, %v1296_v44 }
 0x184   : > { %v1406_v62 = vadd.f32 %v1405_v61, %v1391_v60 }
 0x189   : > { %v1298_v5 = vpop.f32.mrf.mxu0 }
 0x18a   : > { %v1782_v2 = vpack.c.bf16 %v1298_v5, %v1296_v44  ;;  %v1365_v63 = vadd.f32 %v1364_v45, %v1298_v5  ;;  %v1392_v0 = vmul.f32 %v1298_v5, %v1298_v5 }
 0x18c   : > { %1861 = vst [vmem:[%s2799_s23 + $0x8] sm:$0xff] %v1782_v2   ;;  %v1366_v19 = vadd.f32 %v1365_v63, %v1301_v51  ;;  %v1407_v6 = vadd.f32 %v1406_v62, %v1392_v0 }
 0x18e   : > { %v1408_v7 = vadd.f32 %v1407_v6, %v1393_v3  ;;  %v1367_v53 = vadd.f32 %v1366_v19, %v1303_v52 }
 0x190   : > { %v1409_v20 = vadd.f32 %v1408_v7, %v1394_v4 }
 0x196   : > { %v1321_v9 = vpop.f32.mrf.mxu3 }
 0x197   : > { %v1401_v36 = vmul.f32 %v1321_v9, %v1321_v9 }
 0x19e   : > { %v1323_v12 = vpop.f32.mrf.mxu3 }
 0x19f   : > { %v1807_v14 = vpack.c.bf16 %v1323_v12, %v1321_v9  ;;  %v1402_v41 = vmul.f32 %v1323_v12, %v1323_v12 }
 0x1a1   : > { %1866 = vst [vmem:[%s2799_s23 + $0x30] sm:$0xff] %v1807_v14  }
 0x1b0   : > { %v1306_v15 = vpop.f32.mrf.mxu1 }
 0x1b1   : > { %v1395_v17 = vmul.f32 %v1306_v15, %v1306_v15  ;;  %v1368_v18 = vadd.f32 %v1367_v53, %v1306_v15 }
 0x1b3   : > { %v1410_v40 = vadd.f32 %v1409_v20, %v1395_v17 }
 0x1b8   : > { %v1308_v22 = vpop.f32.mrf.mxu1 }
 0x1b9   : > { %v1792_v10 = vpack.c.bf16 %v1308_v22, %v1306_v15  ;;  %v1369_v23 = vadd.f32 %v1368_v18, %v1308_v22  ;;  %v1396_v21 = vmul.f32 %v1308_v22, %v1308_v22 }
 0x1bb   : > { %1863 = vst [vmem:[%s2799_s23 + $0x18] sm:$0xff] %v1792_v10   ;;  %v1411_v8 = vadd.f32 %v1410_v40, %v1396_v21  ;;  %v1370_v43 = vadd.f32 %v1369_v23, %v1311_v42 }
 0x1bd   : > { %v1412_v16 = vadd.f32 %v1411_v8, %v1397_v13  ;;  %v1371_v25 = vadd.f32 %v1370_v43, %v1313_v55 }
 0x1be   : > { %v1316_v24 = vpop.f32.mrf.mxu2 }
 0x1bf   : > { %v1399_v26 = vmul.f32 %v1316_v24, %v1316_v24  ;;  %v1413_v34 = vadd.f32 %v1412_v16, %v1398_v59  ;;  %v1372_v29 = vadd.f32 %v1371_v25, %v1316_v24 }
 0x1c1   : > { %v1414_v1 = vadd.f32 %v1413_v34, %v1399_v26 }
 0x1c6   : > { %v1318_v32 = vpop.f32.mrf.mxu2 }
 0x1c7   : > { %v1802_v11 = vpack.c.bf16 %v1318_v32, %v1316_v24  ;;  %v1373_v33 = vadd.f32 %v1372_v29, %v1318_v32  ;;  %v1400_v30 = vmul.f32 %v1318_v32, %v1318_v32 }
 0x1c9   : > { %1865 = vst [vmem:[%s2799_s23 + $0x28] sm:$0xff] %v1802_v11   ;;  %v1374_v37 = vadd.f32 %v1373_v33, %v1321_v9  ;;  %v1415_v38 = vadd.f32 %v1414_v1, %v1400_v30 }
 0x1cb   : > { %v1416_v39 = vadd.f32 %v1415_v38, %v1401_v36  ;;  %v1375_v46 = vadd.f32 %v1374_v37, %v1323_v12 }
 0x1cd   : > { %v1417_v28 = vadd.f32 %v1416_v39, %v1402_v41 }
 0x1d5   : > { %v1326_v31 = vpop.f32.mrf.mxu3 }
 0x1d6   : > { %v1403_v27 = vmul.f32 %v1326_v31, %v1326_v31  ;;  %v1376_v47 = vadd.f32 %v1375_v46, %v1326_v31 }
 0x1d8   : > { %v1418_v49 = vadd.f32 %v1417_v28, %v1403_v27 }
 0x1dd   : > { %v1328_v48 = vpop.f32.mrf.mxu3 }
 0x1de   : > { %v1812_v50 = vpack.c.bf16 %v1328_v48, %v1326_v31  ;;  %v1377_v51 = vadd.f32 %v1376_v47, %v1328_v48  ;;  %v1404_v52 = vmul.f32 %v1328_v48, %v1328_v48 }
 0x1e0   : > { %1867 = vst [vmem:[%s2799_s23 + $0x38] sm:$0xff] %v1812_v50   ;;  %v1378_v54 = vrot.slane %v1377_v51, 4  ;;  %v1419_v42 = vadd.f32 %v1418_v49, %v1404_v52 }
 0x1e1   : > { %2066 = shalt.err (!%p2063_p12)
}
 0x1e2   : > { %s2199_s18 = smov 64   ;;  %s2928_s19 = smov 4   ;;  %v1379_v55 = vadd.f32 %v1378_v54, %v1377_v51  ;;  %v1420_v56 = vrot.slane %v1419_v42, 4  ;;  %v1384_v57 = vlaneseq }
 0x1e3   : > { %1893 = dma.vmem_to_hbm [thread:$0]  (%p2295_p5), %s2822_s5, 1024, %s1450_s29, %s1428_s30, %s2199_s18, %s2199_s18, %s2928_s19  }
 0x1e4   : > { %s2929_s11 = sand.u32 1, %s2153_s13   ;;  %s1463_s1 = sadd.s32 %s1713_s9, %s1712_s8  ;;  %v1380_v44 = vrot.slane %v1379_v55, 2  ;;  %v1421_v58 = vadd.f32 %v1420_v56, %v1419_v42  ;;  %vm1386_vm11 = vcmp.lt.s32.totalorder %v1384_v57, 128 }
 0x1e5   : > { %s1594_s0 = sshll.u32 %s2929_s11, 1  ;;  %s1464_s23 = scalar_lea.hbm %s2902_s3, %s1463_s1 }
 0x1e6   : > { %v1381_v35 = vadd.f32 %v1380_v44, %v1379_v55  ;;  %v1422_v60 = vrot.slane %v1421_v58, 2  ;;  %s192_s4 = scalar_lea.vmem [#allocation4], %s1594_s0  ;;  %s1468_s5 = sshll.u32 %s1464_s23, 4  ;;  %s1469_s5 = int_to_ptr.hbm [resolvable:$true] %s1468_s5 }
 0x1e7   : > { %s1466_s29 = sshll.u32 %s192_s4, 4  ;;  %s2930_s24 = smov %s2929_s11  ;;  %s1467_s29 = int_to_ptr.vmem [resolvable:$true] %s1466_s29 }
 0x1e8   : > { %v1382_v61 = vrot.slane %v1381_v35, 1  ;;  %v1423_v45 = vadd.f32 %v1422_v60, %v1421_v58  ;;  %s1433_s8 = scalar_lea.sflag [#allocation5], %s2930_s24  ;;  %s2081_s9 = sshra.s32 %s1469_s5, 4  ;;  %s2082_s9 = int_to_ptr.hbm [resolvable:$true] %s2081_s9 }
 0x1e9   : > { %s2083_s30 = scalar_lea.hbm %s2082_s9, 2  ;;  %s2087_s18 = scalar_lea.hbm %s2902_s3, 8 }
 0x1ea   : > { %v1383_v5 = vadd.f32 %v1382_v61, %v1381_v35  ;;  %v1424_v62 = vrot.slane %v1423_v45, 1  ;;  %p2084_p5 = scmp.ne.s32.totalorder %s2082_s9, %s2083_s30  ;;  %p2088_p4 = scmp.lt.s32.totalorder %s2082_s9, %s2902_s3 }
 0x1eb   : > { %p2089_p2 = scmp.lt.s32.totalorder %s2087_s18, %s2083_s30 }
 0x1ec   : > { %v1425_v2 = vadd.f32 %v1424_v62, %v1423_v45  ;;  %1388 = vst.msk [vmem:[%s192_s4] sm:$0x1] %vm1386_vm11, %v1383_v5  ;;  %p2085_p13 = pnand %p2084_p5, %p2332_p0 }
 0x1ed   : > { %p2090_p6 = por %p2089_p2, %p2088_p4 }
 0x1ee   : > { %1426 = vst.msk [vmem:[%s192_s4 + $0x1] sm:$0x1] %vm1386_vm11, %v1425_v2  ;;  %p2086_p3 = pneg %p2085_p13 }
 0x1f0   : > { %p2091_p8 = pnand %p2090_p6, %p2086_p3 }
 0x1f2   : > { %2094 = shalt.err (!%p2091_p8)
}
 0x1f3   : > { %1894 = dma.vmem_to_hbm [thread:$0]  (%p2332_p0), %s1467_s29, 32, %s1469_s5, %s1433_s8  }
 0x1f4 PF: > { %s2931_s0 = sld [smem:[#allocation8_spill]]  ;;  %p1904_p9 = scmp.ge.s32.totalorder %s2189_s22, 2 }
 0x1f6   : > { %p1898_p10 = pnand %p1904_p9, %p2307_p7 }
 0x1f8   : > { %p1899_p11 = pneg %p1898_p10 }
 0x1fa   : > { %s1480_s1 = sand.u32 1, %s2931_s0  }
 0x1fb   : > { %s1481_s25 = scalar_lea.sflag [#allocation3], %s1480_s1 }
 0x1fc   : > { %2140 = dma.done.wait (%p1899_p11), %s1481_s25, 1024  }
 0x1fd   : > { %2142 = vsyncadd (%p1899_p11), %s1481_s25, 4294966272  ;;  %s1490_s26 = sand.u32 1, %s2149_s12   ;;  %p1901_p12 = pnand %p1904_p9, %p2338_p1 }
 0x1fe   : > { %s1491_s20 = scalar_lea.sflag [#allocation5], %s1490_s26 }
 0x1ff   : > { %p1902_p5 = pneg %p1901_p12 }
 0x201   : > { %2144 = dma.done.wait (%p1902_p5), %s1491_s20, 32  }
 0x202   : > { %2146 = vsyncadd (%p1902_p5), %s1491_s20, 4294967264  ;;  %s20_s22 = sadd.s32 1, %s2189_s22   ;;  %s2932_s6 = smov %s2322_s15 }
 0x203   : > { %p17_p0 = scmp.ge.s32.totalorder %s20_s22, 6   ;;  %s2933_s18 = sld [smem:[#allocation9_spill]] }
 0x204   : > { %s2934_s20 = sld [smem:[#allocation10_spill]]  ;;  %s2936_s12 = smov %s2153_s13 }
 0x205   : > { %s2935_s23 = sld [smem:[#allocation11_spill]]  ;;  %s2937_s13 = smov %s2157_s14 }
 0x206   : > { %s2938_s14 = smov %s2319_s27  ;;  %s2939_s15 = smov %s2165_s16 }
 0x207   : > { %s2940_s16 = smov %s2169_s17  ;;  %s2941_s17 = smov %s2932_s6 }
 0x208   : > { %s2942_s19 = smov %s2185_s21  ;;  %19 = sbr.rel (!%p17_p0) target bundleno = 12 (0xc), region = 83 }
 0x20b   : > { %s2943_s21 = smov %s2935_s23 }
 0x20d   :  { %1497 = vsyncpa [#allocation3], 1 }
 0x20e   :  { %1499 = vsyncpa [#allocation3 + $0x1], 1 }
 0x20f   :  { %1500 = vsyncpa [#allocation5], 1 }
 0x210   :  { %1502 = vsyncpa [#allocation5 + $0x1], 1 }

// kernel: tpu_custom_call.1
= control target key start
LH: loop header
LB: loop body
LE: loop exit
PB: predicated region body
PF: predicated region fallthrough
CT: control target
= control target key end

     0   :  { %s2899_s0 = inlined_call_operand.vmem [shape: bf16[2,18,18,4], index: 0, kind: input, shape index: {}]   ;;  %s2900_s1 = inlined_call_operand.vmem [shape: bf16[128,128], index: 1, kind: input, shape index: {}]   ;;  %s2901_s2 = inlined_call_operand.hbm [shape: bf16[512,128], index: 2, kind: output, shape index: {0}]   ;;  %s2902_s3 = inlined_call_operand.hbm [shape: f32[2,2,1,256], index: 3, kind: output, shape index: {1}]  }
   0x1   :  { %2912 = sst [smem:[#allocation12_spill]] %s2899_s0 }
   0x2   :  { %2913 = sst [smem:[#allocation13_spill]] %s2900_s1 }
   0x3   :  { %9 = vsyncpa [#allocation3], 0 }
   0x4   :  { %11 = vsyncpa [#allocation3 + $0x1], 0 }
   0x5   :  { %12 = vsyncpa [#allocation5], 0 }
   0x6   :  { %14 = vsyncpa [#allocation5 + $0x1], 0  ;;  %s2220_s12 = smov 0   ;;  %s2222_s13 = smov 0  }
   0x7   :  { %s2224_s14 = smov 0   ;;  %s2226_s15 = smov 0  }
   0x8   :  { %s2228_s16 = smov 0   ;;  %s2230_s17 = smov 0  }
   0x9   :  { %s2232_s18 = smov 0   ;;  %s2234_s19 = smov 0  }
   0xa   :  { %s2236_s20 = smov 0   ;;  %s2238_s21 = smov 0  }
   0xb   :  { %s2240_s22 = smov 0  }
   0xc LB: > { %2914 = sst [smem:[#allocation8_spill]] %s2161_s15  ;;  %s1586_s23 = sadd.s32 4294967295, %s2189_s22   ;;  %s2189_s22 = sphi %s2240_s22, %s20_s22   ;;  %s2185_s21 = sphi %s2238_s21, %s2943_s21   ;;  %s2181_s20 = sphi %s2236_s20, %s2934_s20   ;;  %s2177_s19 = sphi %s2234_s19, %s2942_s19   ;;  %s2173_s18 = sphi %s2232_s18, %s2933_s18   ;;  %s2169_s17 = sphi %s2230_s17, %s2941_s17   ;;  %s2165_s16 = sphi %s2228_s16, %s2940_s16   ;;  %s2161_s15 = sphi %s2226_s15, %s2939_s15   ;;  %s2157_s14 = sphi %s2224_s14, %s2938_s14   ;;  %s2153_s13 = sphi %s2222_s13, %s2937_s13   ;;  %s2149_s12 = sphi %s2220_s12, %s2936_s12  }
   0xd   : > { %2915 = sst [smem:[#allocation9_spill]] %s2181_s20  ;;  %s1587_s24 = sadd.s32 4294967294, %s2189_s22  }
   0xe   : > { %s29_s25 = sadd.s32 1, %s2181_s20  ;;  %s32_s26 = sadd.s32 1, %s2185_s21 }
   0xf   : > { %p30_p0 = scmp.ge.s32.totalorder %s29_s25, 2  ;;  %s1588_s27 = sshll.u32 %s2185_s21, 1 }
  0x10   : > { %s84_s28 = sadd.s32 %s2181_s20, %s1588_s27  ;;  %s90_s29 = sadd.s32 1, %s2169_s17 }
  0x11   : > { %s2945_s25 = smov (%p30_p0, %s29_s25), 0  ;;  %s2947_s26 = smov (!%p30_p0, %s32_s26), %s2185_s21 }
  0x12   : > { %2916 = sst [smem:[#allocation10_spill]] %s2945_s25  ;;  %p100_p1 = scmp.ne.s32.totalorder %s2169_s17, %s2165_s16 }
  0x13   : > { %p2287_p2 = scmp.eq.s32.totalorder %s1586_s23, 3  ;;  %p34_p3 = scmp.ge.s32.totalorder %s2947_s26, 2 }
  0x14   : > { %p106_p4 = scmp.ne.s32.totalorder %s2165_s16, %s2161_s15  ;;  %p2299_p6 = scmp.eq.s32.totalorder %s1587_s24, 3 }
  0x15   : > { %p2295_p5 = por %p2287_p2, %p100_p1  ;;  %s2949_s26 = smov (%p34_p3, %s2947_s26), 0 }
  0x16   : > { %2920 = sst [smem:[#allocation11_spill]] %s2949_s26  ;;  %p2307_p7 = por %p2299_p6, %p106_p4 }
  0x17   : > { %s114_s7 = ssub.s32 %s2181_s20, %s2945_s25  ;;  %s1589_s8 = sshll.u32 %s2949_s26, 1 }
  0x18   : > { %s113_s9 = ssub.s32 %s2185_s21, %s2949_s26  ;;  %s86_s10 = sadd.s32 %s1589_s8, %s2945_s25 }
  0x19   : > { %s115_s11 = sor.u32 %s114_s7, %s113_s9  ;;  %s87_s23 = ssub.s32 %s84_s28, %s86_s10 }
  0x1a   : > { %p116_p8 = scmp.eq.s32.totalorder %s115_s11, 0  ;;  %p88_p9 = scmp.eq.s32.totalorder %s87_s23, 0 }
  0x1b   : > { %s118_s24 = sadd.s32 1, %s2157_s14  ;;  %p128_p10 = scmp.ne.s32.totalorder %s2157_s14, %s2153_s13 }
  0x1c   : > { %s2319_s27 = scalar_select %p116_p8, %s2157_s14, %s118_s24  }
  0x1d   : > { %s2322_s15 = scalar_select %p88_p9, %s2169_s17, %s90_s29  }
  0x1e   : > { %p134_p11 = scmp.ne.s32.totalorder %s2153_s13, %s2149_s12  ;;  %p1592_p12 = scmp.ge.s32.totalorder %s2189_s22, 1 }
  0x1f   : > { %p164_p13 = scmp.lt.s32.totalorder %s2189_s22, 5  ;;  %p2332_p0 = por %p128_p10, %p2287_p2 }
  0x20   : > { %p2338_p1 = por %p134_p11, %p2299_p6 }
  0x21   : > { %p165_p3 = pnand %p1592_p12, %p164_p13 }
  0x22   : > { %p193_p4 = scmp.lt.s32.totalorder (!%p165_p3), %s2177_s19, 1  ;;  %s1716_s29 = smul.u32 (!%p165_p3), 96, %s2173_s18 }
  0x23   : > { %168 = sbr.rel (%p165_p3) target bundleno = 500 (0x1f4), region = 28  ;;  %s2924_s0 = sld [smem:[#allocation12_spill]] (!%p165_p3) }
  0x24   : > { %s2191_s5 = smov (!%p165_p3), 24   ;;  %s2192_s23 = smov (!%p165_p3), 12  }
  0x25   : > { %s2193_s24 = smov (!%p165_p3), 8   ;;  %s2197_s9 = smov (!%p165_p3), 16  }
  0x26   : > { %s2198_s30 = smov (!%p165_p3), 28   ;;  %s2925_s1 = sld [smem:[#allocation13_spill]] (!%p165_p3) }
  0x27   : > { %s2059_s26 = scalar_lea.hbm (!%p165_p3), %s2901_s2, 256 }
  0x28   : > { %s194_s28 = scalar_select %p193_p4, %s2177_s19, 1  ;;  %vm511_vm0 = vcmask 1046528   ;;  %vm374_vm1 = vsmask.f32 7424  ;;  %vm1064_vm2 = vcmask 31744   ;;  %vm1081_vm3 = vcmask 64512  }
  0x29   : > { %vm1098_vm4 = vcmask 97280   ;;  %vm1115_vm5 = vcmask 130048   ;;  %vm1132_vm6 = vcmask 162816   ;;  %vm1149_vm7 = vcmask 195584  }
  0x2a   : > { %s1892_s8 = smul.u32 216, %s194_s28  ;;  %s2905_s28 = smov 32   ;;  %vm1166_vm8 = vcmask 228352   ;;  %vm1183_vm9 = vcmask 261120   ;;  %vm1200_vm10 = vcmask 293888  }
  0x2c   : > { %s197_s10 = scalar_lea.vmem %s2924_s0, %s1892_s8  ;;  %s2907_s8 = smov 20  }
  0x2d   : > { %s2348_s11 = scalar_lea.vmem %s197_s10, %s1716_s29  ;;  %s2909_s29 = smov 4  }
  0x2e   : > { %v1601_v0 = vld [vmem:[%s2348_s11 + $0xc] sm:$0xff]   ;;  %v1825_v2 = vld [vmem:[%s2348_s11] sm:$0xf0]  ;;  %v222_v3 = vld [vmem:[%s2348_s11 + $0x8] sm:$0x1] }
  0x2f   : > { %v2352_v1 = vld [vmem:[%s2348_s11 + $0xc] sm:$0xf0]  ;;  %v1826_v4 = vld [vmem:[%s2348_s11] sm:$0xe]  ;;  %v358_v5 = vunpack.c.l.b16 %v222_v3  ;;  %v1849_v6 = vld [vmem:[%s2348_s11 + $0x18] sm:$0xf0]  ;;  %592 = vrot.lane.b32.xlu1 %v1601_v0, %s2192_s23 }
  0x30   : > { %v1651_v7 = vld [vmem:[%s2348_s11 + $0x20] sm:$0x1]  ;;  %v1827_v8 = vor.u32 %v1826_v4, %v1825_v2  ;;  %v1850_v9 = vld [vmem:[%s2348_s11 + $0x18] sm:$0xe]  ;;  %v1617_v12 = vld [vmem:[%s2348_s11 + $0x14] sm:$0x1] }
  0x31   : > { %v872_v10 = vunpack.c.l.b16 %v1651_v7  ;;  %v2361_v11 = vld [vmem:[%s2348_s11] sm:$0xff]   ;;  %v366_v13 = vpack.c.b16 %v358_v5, %v358_v5  ;;  %v1851_v14 = vor.u32 %v1850_v9, %v1849_v6  ;;  %v2366_v16 = vld [vmem:[%s2348_s11 + $0x18] sm:$0xff]   ;;  %v616_v20 = vunpack.c.l.b16 %v1617_v12  ;;  %v2004_v38 = vld [vmem:[%s2348_s11 + $0xc] sm:$0xe] }
  0x32   : > { %v376_v15 = vshrl.u32 %v2361_v11, 16  ;;  %v512_v17 = vrot.slane %v1827_v8, 1  ;;  %v378_v19 = vshll.u32 %v2361_v11, 16  ;;  %848 = vrot.lane.b32.xlu2 %v2366_v16, %s2191_s5  ;;  %v635_v21 = vshll.u32 %v1601_v0, 16  ;;  %v226_v28 = vld [vmem:[%s2348_s11 + $0x38] sm:$0x1] }
  0x33   : > { %v880_v18 = vpack.c.b16 %v872_v10, %v872_v10  ;;  %v513_v22 = vrot.slane %v366_v13, 1  ;;  %v383_v23 = vshll.u32 %v366_v13, 16  ;;  %v1024_v24 = vrot.slane %v1851_v14, 1  ;;  %v224_v34 = vld [vmem:[%s2348_s11 + $0x20] sm:$0x1]  ;;  %v2380_v40 = vld [vmem:[%s2348_s11 + $0x30] sm:$0xff]  }
  0x34   : > { %v380_v26 = vrot.slane %v378_v19, 1  ;;  %v624_v27 = vpack.c.b16 %v616_v20, %v616_v20  ;;  %v633_v32 = vshrl.u32 %v1601_v0, 16  ;;  %v637_v33 = vrot.slane %v635_v21, 1  ;;  %v2384_v43 = vld [vmem:[%s2348_s11 + $0x24] sm:$0xff]   ;;  %v1619_v55 = vld [vmem:[%s2348_s11 + $0x2c] sm:$0x1] }
  0x35   : > { %v1025_v25 = vrot.slane %v880_v18, 1  ;;  %v514_v29 = vsel %vm511_vm0, %v512_v17, %v513_v22  ;;  %v385_v31 = vrot.slane %v383_v23, 1  ;;  %v891_v36 = vshll.u32 %v2366_v16, 16  ;;  %v2387_v44 = vld [vmem:[%s2348_s11 + $0x24] sm:$0xf0]  ;;  %v1609_v4 = vld [vmem:[%s2348_s11 + $0x3c] sm:$0xff]  }
  0x36   : > { %536 = vrot.lane.b32.xlu0 %v514_v29, %s2193_s24  ;;  %v381_v30 = vor.u32 %v380_v26, %v376_v15  ;;  %v640_v35 = vshll.u32 %v624_v27, 16  ;;  %v362_v37 = vunpack.c.l.b16 %v226_v28  ;;  %v889_v41 = vshrl.u32 %v2366_v16, 16  ;;  %v1828_v0 = vld [vmem:[%s2348_s11 + $0x18] sm:$0xf0]  ;;  %v2408_v5 = vld [vmem:[%s2348_s11 + $0x3c] sm:$0xf0] }
  0x37   : > { %v1026_v39 = vsel %vm511_vm0, %v1024_v24, %v1025_v25  ;;  %v360_v42 = vunpack.c.l.b16 %v224_v34  ;;  %v638_v46 = vor.u32 %v637_v33, %v633_v32  ;;  %v896_v47 = vshll.u32 %v880_v18, 16  ;;  %v1621_v14 = vld [vmem:[%s2348_s11 + $0x44] sm:$0x1]  ;;  %v1831_v23 = vld [vmem:[%s2348_s11 + $0x30] sm:$0xf0] }
  0x38   : > { %v386_v45 = vsel %vm374_vm1, %v381_v30, %v385_v31  ;;  %1048 = vrot.lane.b32.xlu1 %v1026_v39, %s2905_s28  ;;  %v642_v48 = vrot.slane %v640_v35, 1  ;;  %v893_v49 = vrot.slane %v891_v36, 1  ;;  %v2391_v50 = vpack.c.b16 %v362_v37, %v362_v37  ;;  %v1832_v24 = vld [vmem:[%s2348_s11 + $0x30] sm:$0xe]  ;;  %v2007_v32 = vld [vmem:[%s2348_s11 + $0x24] sm:$0xe] }
  0x39   : > { %v426_v51 = vshll.u32 %v2380_v40, 16  ;;  %v368_v52 = vpack.c.b16 %v360_v42, %v360_v42  ;;  %v2005_v53 = vor.u32 %v2004_v38, %v2352_v1  ;;  %v769_v54 = vrot.slane %v624_v27, 1  ;;  %v1829_v1 = vld [vmem:[%s2348_s11 + $0x18] sm:$0xe]  ;;  %v1653_v33 = vld [vmem:[%s2348_s11 + $0x38] sm:$0x1] }
  0x3a   : > { %v424_v56 = vshrl.u32 %v2380_v40, 16  ;;  %v2398_v59 = vor.u32 %v893_v49, %v889_v41  ;;  %v898_v60 = vrot.slane %v896_v47, 1  ;;  %v431_v62 = vshll.u32 %v2391_v50, 16  ;;  %v2434_v42 = vld [vmem:[%s2348_s11 + $0xc] sm:$0xff]  }
  0x3b   : > { %v768_v57 = vrot.slane %v2005_v53, 1  ;;  %v407_v58 = vshll.u32 %v368_v52, 16  ;;  %v428_v61 = vrot.slane %v426_v51, 1  ;;  %v643_v63 = vsel %vm374_vm1, %v638_v46, %v642_v48  ;;  %v2010_v51 = vld [vmem:[%s2348_s11 + $0x3c] sm:$0xe] }
  0x3c   : > { %v618_v3 = vunpack.c.l.b16 %v1619_v55  ;;  %v899_v7 = vsel %vm374_vm1, %v2398_v59, %v898_v60  ;;  %v433_v9 = vrot.slane %v431_v62, 1  ;;  %v1830_v10 = vor.u32 %v1829_v1, %v1828_v0  ;;  %v1655_v62 = vld [vmem:[%s2348_s11 + $0x50] sm:$0x1] }
  0x3d   : > { %v770_v2 = vsel %vm511_vm0, %v768_v57, %v769_v54  ;;  %v409_v6 = vrot.slane %v407_v58, 1  ;;  %v2413_v8 = vor.u32 %v428_v61, %v424_v56  ;;  %v659_v13 = vshll.u32 %v2384_v43, 16 }
  0x3e   : > { %471 = vrot.lane.b32.xlu0 %v386_v45, %s2909_s29  ;;  %792 = vrot.lane.b32.xlu2 %v770_v2, %s2907_s8  ;;  %v626_v12 = vpack.c.b16 %v618_v3, %v618_v3  ;;  %v518_v18 = vrot.slane %v1830_v10, 1  ;;  %v519_v19 = vrot.slane %v368_v52, 1  ;;  %v657_v20 = vshrl.u32 %v2384_v43, 16  ;;  %v2437_v45 = vld [vmem:[%s2348_s11 + $0xc] sm:$0xf0]  ;;  %v2457_v2 = vld [vmem:[%s2348_s11 + $0x48] sm:$0xff]  }
  0x3f   : > { %v410_v15 = vsel %vm374_vm1, %v2398_v59, %v409_v6  ;;  %v434_v17 = vsel %vm374_vm1, %v2413_v8, %v433_v9  ;;  %v661_v21 = vrot.slane %v659_v13, 1  ;;  %v620_v25 = vunpack.c.l.b16 %v1621_v14  ;;  %v223_v52 = vld [vmem:[%s2348_s11 + $0x14] sm:$0x1] }
  0x40   : > { %728 = vrot.lane.b32.xlu1 %v643_v63, %s2197_s9  ;;  %v664_v22 = vshll.u32 %v626_v12, 16  ;;  %v520_v26 = vsel %vm511_vm0, %v518_v18, %v519_v19  ;;  %v1833_v27 = vor.u32 %v1832_v24, %v1831_v23  ;;  %v683_v31 = vshll.u32 %v1609_v4, 16  ;;  %v1852_v6 = vld [vmem:[%s2348_s11 + $0x30] sm:$0xf0]  ;;  %v2013_v18 = vld [vmem:[%s2348_s11 + $0xc] sm:$0xe] }
  0x41   : > { %v662_v28 = vor.u32 %v661_v21, %v657_v20  ;;  %v628_v30 = vpack.c.b16 %v620_v25, %v620_v25  ;;  %v525_v35 = vrot.slane %v2391_v50, 1  ;;  %v874_v36 = vunpack.c.l.b16 %v1653_v33  ;;  %v1855_v19 = vld [vmem:[%s2348_s11 + $0x48] sm:$0xf0]  ;;  %v1856_v20 = vld [vmem:[%s2348_s11 + $0x48] sm:$0xe] }
  0x42   : > { %v666_v29 = vrot.slane %v664_v22, 1  ;;  %v524_v34 = vrot.slane %v1833_v27, 1  ;;  %v681_v38 = vshrl.u32 %v1609_v4, 16  ;;  %v685_v39 = vrot.slane %v683_v31, 1  ;;  %v228_v21 = vld [vmem:[%s2348_s11 + $0x50] sm:$0x1] }
  0x43   : > { %v688_v41 = vshll.u32 %v628_v30, 16  ;;  %v2008_v47 = vor.u32 %v2007_v32, %v2387_v44  ;;  %v882_v50 = vpack.c.b16 %v874_v36, %v874_v36  ;;  %v775_v54 = vrot.slane %v626_v12, 1  ;;  %v1834_v36 = vld [vmem:[%s2348_s11 + $0x48] sm:$0xf0] }
  0x44   : > { %v667_v37 = vsel %vm374_vm1, %v662_v28, %v666_v29  ;;  %v526_v46 = vsel %vm511_vm0, %v524_v34, %v525_v35  ;;  %v686_v48 = vor.u32 %v685_v39, %v681_v38  ;;  %v359_v56 = vunpack.c.l.b16 %v223_v52  ;;  %v1618_v39 = vld [vmem:[%s2348_s11 + $0x20] sm:$0x1]  ;;  %v2015_v52 = vld [vmem:[%s2348_s11 + $0x54] sm:$0xf0] }
  0x45   : > { %v690_v49 = vrot.slane %v688_v41, 1  ;;  %v774_v53 = vrot.slane %v2008_v47, 1  ;;  %v2011_v57 = vor.u32 %v2010_v51, %v2408_v5  ;;  %v390_v61 = vshll.u32 %v2434_v42, 16  ;;  %v1613_v51 = vld [vmem:[%s2348_s11 + $0x54] sm:$0xff]  }
  0x46   : > { %984 = vrot.lane.b32.xlu0 %v899_v7, %s2198_s30  ;;  %475 = vrot.lane.b32.xlu2 %v410_v15, %s2909_s29  ;;  %v367_v60 = vpack.c.b16 %v359_v56, %v359_v56  ;;  %v781_v0 = vrot.slane %v628_v30, 1  ;;  %v388_v1 = vshrl.u32 %v2434_v42, 16  ;;  %v1853_v7 = vld [vmem:[%s2348_s11 + $0x30] sm:$0xe]  ;;  %v876_v9 = vunpack.c.l.b16 %v1655_v62  ;;  %v1837_v56 = vld [vmem:[%s2348_s11 + $0x18] sm:$0xf0] }
  0x47   : > { %v691_v55 = vsel %vm374_vm1, %v686_v48, %v690_v49  ;;  %v776_v44 = vsel %vm511_vm0, %v774_v53, %v775_v54  ;;  %v780_v63 = vrot.slane %v2011_v57, 1  ;;  %v939_v10 = vshll.u32 %v2457_v2, 16 }
  0x48   : > { %479 = vrot.lane.b32.xlu1 %v434_v17, %s2909_s29  ;;  %v395_v5 = vshll.u32 %v367_v60, 16  ;;  %v1854_v13 = vor.u32 %v1853_v7, %v1852_v6  ;;  %v884_v17 = vpack.c.b16 %v876_v9, %v876_v9  ;;  %v937_v22 = vshrl.u32 %v2457_v2, 16  ;;  %v1724_v7 = vld [vmem:[%s2925_s1 + $0x38] sm:$0xff] }
  0x49   : > { %v782_v12 = vsel %vm511_vm0, %v780_v63, %v781_v0  ;;  %v941_v23 = vrot.slane %v939_v10, 1  ;;  %v1857_v28 = vor.u32 %v1856_v20, %v1855_v19  ;;  %v364_v29 = vunpack.c.l.b16 %v228_v21  ;;  %1282 = vmatpush.bf16.msra.mxu0 %v1724_v7  ;;  %1868 = vmatpush.bf16.msra.mxu1 %v1724_v7  ;;  %v1723_v19 = vld [vmem:[%s2925_s1 + $0x30] sm:$0xff] }
  0x4a   : > { %v397_v15 = vrot.slane %v395_v5, 1  ;;  %v944_v24 = vshll.u32 %v884_v17, 16  ;;  %v1030_v25 = vrot.slane %v1854_v13, 1  ;;  %v2014_v33 = vor.u32 %v2013_v18, %v2437_v45  ;;  %v1652_v13 = vld [vmem:[%s2348_s11 + $0x2c] sm:$0x1]  ;;  %1869 = vmatpush.bf16.msra.mxu2 %v1724_v7  ;;  %1870 = vmatpush.bf16.msra.mxu3 %v1724_v7 }
  0x4b   : > { %v2477_v30 = vor.u32 %v941_v23, %v937_v22  ;;  %v1036_v34 = vrot.slane %v1857_v28, 1  ;;  %v1037_v35 = vrot.slane %v884_v17, 1  ;;  %v372_v38 = vpack.c.b16 %v364_v29, %v364_v29  ;;  %v2523_v23 = vld [vmem:[%s2348_s11 + $0x24] sm:$0xff]  }
  0x4c   : > { %v946_v31 = vrot.slane %v944_v24, 1  ;;  %v515_v47 = vrot.slane %v2014_v33, 1  ;;  %v516_v48 = vrot.slane %v367_v60, 1  ;;  %v707_v5 = vshll.u32 %v1613_v51, 16  ;;  %v2526_v24 = vld [vmem:[%s2348_s11 + $0x24] sm:$0xf0] }
  0x4d   : > { %v1038_v49 = vsel %vm511_vm0, %v1036_v34, %v1037_v35  ;;  %v873_v22 = vunpack.c.l.b16 %v1652_v13  ;;  %1283 = vmatpush.bf16.msra.mxu0 %v1723_v19  ;;  %1871 = vmatpush.bf16.msra.mxu1 %v1723_v19  ;;  %v1657_v33 = vld [vmem:[%s2348_s11 + $0x68] sm:$0x1] }
  0x4e   : > { %540 = vrot.lane.b32.xlu0 %v520_v26, %s2193_s24  ;;  %596 = vrot.lane.b32.xlu2 %v2384_v43, %s2192_s23  ;;  %v920_v43 = vshll.u32 %v882_v50, 16  ;;  %v1031_v26 = vrot.slane %v882_v50, 1  ;;  %v947_v41 = vsel %vm374_vm1, %v2477_v30, %v946_v31  ;;  %v617_v50 = vunpack.c.l.b16 %v1618_v39 }
  0x4f   : > { %v517_v54 = vsel %vm511_vm0, %v515_v47, %v516_v48  ;;  %v709_v17 = vrot.slane %v707_v5, 1  ;;  %1872 = vmatpush.bf16.msra.mxu2 %v1723_v19  ;;  %1873 = vmatpush.bf16.msra.mxu3 %v1723_v19  ;;  %v881_v31 = vpack.c.b16 %v873_v22, %v873_v22  ;;  %v2022_v47 = vld [vmem:[%s2348_s11 + $0x24] sm:$0xe]  ;;  %v878_v48 = vunpack.c.l.b16 %v1657_v33 }
  0x50   : > { %732 = vrot.lane.b32.xlu1 %v667_v37, %s2197_s9  ;;  %v922_v58 = vrot.slane %v920_v43, 1  ;;  %v1032_v32 = vsel %vm511_vm0, %v1030_v25, %v1031_v26  ;;  %v1835_v37 = vld [vmem:[%s2348_s11 + $0x48] sm:$0xe]  ;;  %v531_v43 = vrot.slane %v372_v38, 1  ;;  %v625_v57 = vpack.c.b16 %v617_v50, %v617_v50 }
  0x51   : > { %v1836_v45 = vor.u32 %v1835_v37, %v1834_v36  ;;  %v908_v37 = vshll.u32 %v881_v31, 16 }
  0x52   : > { %v923_v3 = vsel %vm374_vm1, %v2413_v8, %v922_v58  ;;  %v1623_v58 = vld [vmem:[%s2348_s11 + $0x5c] sm:$0x1]  ;;  %v772_v10 = vrot.slane %v625_v57, 1 }
  0x53   : > { %v622_v0 = vunpack.c.l.b16 %v1623_v58  ;;  %v910_v50 = vrot.slane %v908_v37, 1  ;;  %v1622_v37 = vld [vmem:[%s2348_s11 + $0x50] sm:$0x1] }
  0x56   : > { %544 = vrot.lane.b32.xlu0 %v526_v46, %s2193_s24  ;;  %600 = vrot.lane.b32.xlu2 %v1609_v4, %s2192_s23  ;;  %v392_v4 = vrot.slane %v390_v61, 1  ;;  %v455_v46 = vshll.u32 %v372_v38, 16  ;;  %v652_v61 = vshll.u32 %v625_v57, 16  ;;  %v1721_v38 = vld [vmem:[%s2925_s1 + $0x20] sm:$0xff]  ;;  %v2562_v57 = vpack.c.b16 %v878_v48, %v878_v48 }
  0x57   : > { %v621_v48 = vunpack.c.l.b16 %v1622_v37 }
  0x58   : > { %736 = vrot.lane.b32.xlu1 %v691_v55, %s2197_s9  ;;  %v393_v14 = vor.u32 %v392_v4, %v388_v1  ;;  %v457_v53 = vrot.slane %v455_v46, 1  ;;  %v530_v55 = vrot.slane %v1836_v45, 1  ;;  %v2016_v1 = vld [vmem:[%s2348_s11 + $0x54] sm:$0xe]  ;;  %v2506_v4 = vld [vmem:[%s2348_s11 + $0x24] sm:$0xf0] }
  0x59   : > { %v654_v6 = vrot.slane %v652_v61, 1  ;;  %v2017_v21 = vor.u32 %v2016_v1, %v2015_v52  ;;  %v2548_v45 = vld [vmem:[%s2348_s11 + $0x60] sm:$0xff]   ;;  %v414_v52 = vshll.u32 %v2523_v23, 16  ;;  %v2023_v1 = vor.u32 %v2022_v47, %v2526_v24 }
  0x5a   : > { %v398_v27 = vsel %vm374_vm1, %v393_v14, %v397_v15  ;;  %v458_v60 = vsel %vm374_vm1, %v2477_v30, %v457_v53  ;;  %v532_v63 = vsel %vm511_vm0, %v530_v55, %v531_v43  ;;  %v705_v15 = vshrl.u32 %v1613_v51, 16  ;;  %v2556_v43 = vld [vmem:[%s2348_s11 + $0x3c] sm:$0xff]  }
  0x5b   : > { %v655_v14 = vsel %vm374_vm1, %v2398_v59, %v654_v6  ;;  %v786_v28 = vrot.slane %v2017_v21, 1  ;;  %v416_v61 = vrot.slane %v414_v52, 1  ;;  %v968_v7 = vshll.u32 %v2562_v57, 16  ;;  %v1717_v24 = vld [vmem:[%s2925_s1] sm:$0xff] }
  0x5c   : > { %v710_v25 = vor.u32 %v709_v17, %v705_v15  ;;  %v1859_v15 = vld [vmem:[%s2348_s11 + $0x60] sm:$0xe]  ;;  %v521_v17 = vrot.slane %v2023_v1, 1 }
  0x5e   : > { %796 = vrot.lane.b32.xlu0 %v776_v44, %s2907_s8  ;;  %852 = vrot.lane.b32.xlu2 %v2380_v40, %s2191_s5  ;;  %v1838_v44 = vld [vmem:[%s2348_s11 + $0x18] sm:$0xe] }
  0x5f   : > { %v1839_v62 = vor.u32 %v1838_v44, %v1837_v56  ;;  %v2559_v56 = vld [vmem:[%s2348_s11 + $0x3c] sm:$0xf0]  ;;  %v963_v44 = vshll.u32 %v2548_v45, 16 }
  0x60   : > { %988 = vrot.lane.b32.xlu1 %v923_v3, %s2198_s30  ;;  %v2503_v3 = vld [vmem:[%s2348_s11 + $0x24] sm:$0xff]  }
  0x61   : > { %v771_v9 = vrot.slane %v1839_v62, 1  ;;  %v903_v59 = vshll.u32 %v2503_v3, 16  ;;  %v901_v35 = vshrl.u32 %v2503_v3, 16  ;;  %v965_v6 = vrot.slane %v963_v44, 1  ;;  %v2618_v44 = vld [vmem:[%s2348_s11 + $0x3c] sm:$0xff]  }
  0x63   : > { %v773_v20 = vsel %vm511_vm0, %v771_v9, %v772_v10  ;;  %v905_v36 = vrot.slane %v903_v59, 1  ;;  %v438_v59 = vshll.u32 %v2556_v43, 16 }
  0x65   : > { %v440_v33 = vrot.slane %v438_v59, 1 }
  0x66   : > { %800 = vrot.lane.b32.xlu0 %v782_v12, %s2907_s8  ;;  %856 = vrot.lane.b32.xlu2 %v2457_v2, %s2191_s5  ;;  %v630_v12 = vpack.c.b16 %v622_v0, %v622_v0 }
  0x68   : > { %473 = vrot.lane.b32.xlu1 %v398_v27, %s2909_s29  ;;  %v712_v18 = vshll.u32 %v630_v12, 16  ;;  %v1722_v27 = vld [vmem:[%s2925_s1 + $0x28] sm:$0xff]  ;;  %v787_v29 = vrot.slane %v630_v12, 1 }
  0x69   : > { %1284 = vmatpush.bf16.msra.mxu0 %v1722_v27  ;;  %1874 = vmatpush.bf16.msra.mxu1 %v1722_v27  ;;  %v1718_v12 = vld [vmem:[%s2925_s1 + $0x8] sm:$0xff] }
  0x6a   : > { %v714_v26 = vrot.slane %v712_v18, 1  ;;  %1875 = vmatpush.bf16.msra.mxu2 %v1722_v27  ;;  %1876 = vmatpush.bf16.msra.mxu3 %v1722_v27  ;;  %v788_v39 = vsel %vm511_vm0, %v786_v28, %v787_v29  ;;  %v1620_v27 = vld [vmem:[%s2348_s11 + $0x38] sm:$0x1] }
  0x6c   : > { %v715_v34 = vsel %vm374_vm1, %v710_v25, %v714_v26  ;;  %v2025_v25 = vld [vmem:[%s2348_s11 + $0x3c] sm:$0xe] }
  0x6d   : > { %1285 = vmatpush.bf16.msra.mxu0 %v1721_v38  ;;  %1877 = vmatpush.bf16.msra.mxu1 %v1721_v38 }
  0x6e   : > { %1052 = vrot.lane.b32.xlu0 %v1032_v32, %s2905_s28  ;;  %992 = vrot.lane.b32.xlu2 %v947_v41, %s2198_s30  ;;  %v225_v32 = vld [vmem:[%s2348_s11 + $0x2c] sm:$0x1] }
  0x6f   : > { %v361_v46 = vunpack.c.l.b16 %v225_v32  ;;  %1878 = vmatpush.bf16.msra.mxu2 %v1721_v38  ;;  %1879 = vmatpush.bf16.msra.mxu3 %v1721_v38  ;;  %v436_v32 = vshrl.u32 %v2556_v43, 16 }
  0x70   : > { %1056 = vrot.lane.b32.xlu1 %v1038_v49, %s2905_s28  ;;  %v906_v49 = vor.u32 %v905_v36, %v901_v35  ;;  %v619_v36 = vunpack.c.l.b16 %v1620_v27  ;;  %s2927_s28 = smov 20   ;;  %v2655_v27 = vld [vmem:[%s2348_s11 + $0x54] sm:$0xff]  }
  0x71   : > { %v369_v55 = vpack.c.b16 %v361_v46, %v361_v46 }
  0x72   : > { %v911_v58 = vsel %vm374_vm1, %v906_v49, %v910_v50  ;;  %v627_v47 = vpack.c.b16 %v619_v36, %v619_v36 }
  0x73   : > { %v419_v62 = vshll.u32 %v369_v55, 16  ;;  %v522_v18 = vrot.slane %v369_v55, 1  ;;  %v1841_v55 = vld [vmem:[%s2348_s11 + $0x30] sm:$0xe] }
  0x74   : > { %v676_v52 = vshll.u32 %v627_v47, 16 }
  0x75   : > { %v421_v10 = vrot.slane %v419_v62, 1  ;;  %v523_v26 = vsel %vm511_vm0, %v521_v17, %v522_v18 }
  0x76   : > { %538 = vrot.lane.b32.xlu0 %v517_v54, %s2193_s24  ;;  %483 = vrot.lane.b32.xlu2 %v458_v60, %s2909_s29  ;;  %v1028_v54 = vrot.slane %v881_v31, 1  ;;  %v412_v60 = vshrl.u32 %v2523_v23, 16  ;;  %v1043_v31 = vrot.slane %v2562_v57, 1  ;;  %v2621_v57 = vld [vmem:[%s2348_s11 + $0x3c] sm:$0xf0]  ;;  %v678_v62 = vrot.slane %v676_v52, 1 }
  0x78   : > { %548 = vrot.lane.b32.xlu1 %v532_v63, %s2193_s24  ;;  %v1719_v63 = vld [vmem:[%s2925_s1 + $0x10] sm:$0xff]  ;;  %v417_v9 = vor.u32 %v416_v61, %v412_v60 }
  0x7a   : > { %v422_v21 = vsel %vm374_vm1, %v417_v9, %v421_v10  ;;  %v1843_v9 = vld [vmem:[%s2348_s11 + $0x48] sm:$0xf0]  ;;  %v1844_v10 = vld [vmem:[%s2348_s11 + $0x48] sm:$0xe] }
  0x7b   : > { %v1845_v18 = vor.u32 %v1844_v10, %v1843_v9 }
  0x7e   : > { %594 = vrot.lane.b32.xlu0 %v2366_v16, %s2192_s23  ;;  %v2019_v16 = vld [vmem:[%s2348_s11 + $0x24] sm:$0xe]  ;;  %730 = vrot.lane.b32.xlu2 %v655_v14, %s2197_s9 }
  0x7f   : > { %v2020_v41 = vor.u32 %v2019_v16, %v2506_v4  ;;  %v227_v4 = vld [vmem:[%s2348_s11 + $0x44] sm:$0x1] }
  0x80   : > { %794 = vrot.lane.b32.xlu1 %v773_v20, %s2907_s8  ;;  %v363_v13 = vunpack.c.l.b16 %v227_v4  ;;  %v1858_v14 = vld [vmem:[%s2348_s11 + $0x60] sm:$0xf0]  ;;  %v970_v20 = vrot.slane %v968_v7, 1  ;;  %v2627_v4 = vld [vmem:[%s2348_s11 + $0x54] sm:$0xff]   ;;  %v778_v7 = vrot.slane %v627_v47, 1 }
  0x81   : > { %v1027_v53 = vrot.slane %v2020_v41, 1  ;;  %v1860_v22 = vor.u32 %v1859_v15, %v1858_v14  ;;  %v441_v41 = vor.u32 %v440_v33, %v436_v32 }
  0x82   : > { %v371_v16 = vpack.c.b16 %v363_v13, %v363_v13 }
  0x83   : > { %v1029_v0 = vsel %vm511_vm0, %v1027_v53, %v1028_v54  ;;  %v1042_v29 = vrot.slane %v1860_v22, 1  ;;  %v1840_v54 = vld [vmem:[%s2348_s11 + $0x30] sm:$0xf0] }
  0x84   : > { %v528_v50 = vrot.slane %v371_v16, 1  ;;  %v1842_v61 = vor.u32 %v1841_v55, %v1840_v54 }
  0x85   : > { %v1044_v38 = vsel %vm511_vm0, %v1042_v29, %v1043_v31  ;;  %v783_v29 = vrot.slane %v1845_v18, 1 }
  0x86   : > { %604 = vrot.lane.b32.xlu0 %v1613_v51, %s2192_s23  ;;  %740 = vrot.lane.b32.xlu2 %v715_v34, %s2197_s9  ;;  %v1720_v51 = vld [vmem:[%s2925_s1 + $0x18] sm:$0xff]  ;;  %v443_v34 = vshll.u32 %v371_v16, 16 }
  0x87   : > { %1286 = vmatpush.bf16.msra.mxu0 %v1720_v51  ;;  %1880 = vmatpush.bf16.msra.mxu1 %v1720_v51  ;;  %v1656_v16 = vld [vmem:[%s2348_s11 + $0x5c] sm:$0x1] }
  0x88   : > { %804 = vrot.lane.b32.xlu1 %v788_v39, %s2907_s8  ;;  %1881 = vmatpush.bf16.msra.mxu2 %v1720_v51  ;;  %s2926_s8 = smov 32   ;;  %v2026_v39 = vor.u32 %v2025_v25, %v2559_v56  ;;  %v445_v46 = vrot.slane %v443_v34, 1  ;;  %v877_v36 = vunpack.c.l.b16 %v1656_v16  ;;  %v2036_v16 = vld [vmem:[%s2348_s11 + $0x6c] sm:$0xf0] }
  0x89   : > { %1882 = vmatpush.bf16.msra.mxu3 %v1720_v51 }
  0x8a   : > { %v527_v49 = vrot.slane %v2026_v39, 1  ;;  %v446_v51 = vsel %vm374_vm1, %v441_v41, %v445_v46  ;;  %v951_v39 = vshll.u32 %v2627_v4, 16  ;;  %v229_v41 = vld [vmem:[%s2348_s11 + $0x5c] sm:$0x1]  ;;  %v885_v52 = vpack.c.b16 %v877_v36, %v877_v36 }
  0x8b   : > { %1287 = vmatpush.bf16.msra.mxu0 %v1719_v63  ;;  %1883 = vmatpush.bf16.msra.mxu1 %v1719_v63 }
  0x8c   : > { %v2575_v5 = vpop.permute.xlu2 %848  ;;  %1884 = vmatpush.bf16.msra.mxu2 %v1719_v63  ;;  %v529_v60 = vsel %vm511_vm0, %v527_v49, %v528_v50 }
  0x8d   : > { %1885 = vmatpush.bf16.msra.mxu3 %v1719_v63 }
  0x8e   : > { %850 = vrot.lane.b32.xlu0 %v2503_v3, %s2191_s5  ;;  %v961_v3 = vshrl.u32 %v2548_v45, 16  ;;  %986 = vrot.lane.b32.xlu2 %v911_v58, %s2198_s30  ;;  %v629_v58 = vpack.c.b16 %v621_v48, %v621_v48 }
  0x8f   : > { %1288 = vmatpush.bf16.msra.mxu0 %v1718_v12  ;;  %1886 = vmatpush.bf16.msra.mxu1 %v1718_v12 }
  0x90   : > { %1050 = vrot.lane.b32.xlu1 %v1029_v0, %s2926_s8  ;;  %1887 = vmatpush.bf16.msra.mxu2 %v1718_v12  ;;  %v2585_v19 = vor.u32 %v965_v6, %v961_v3  ;;  %v1654_v0 = vld [vmem:[%s2348_s11 + $0x44] sm:$0x1]  ;;  %v700_v1 = vshll.u32 %v629_v58, 16  ;;  %v2630_v3 = vld [vmem:[%s2348_s11 + $0x54] sm:$0xf0]  ;;  %v777_v6 = vrot.slane %v1842_v61, 1 }
  0x91   : > { %1888 = vmatpush.bf16.msra.mxu3 %v1718_v12  ;;  %v679_v12 = vsel %vm374_vm1, %v2413_v8, %v678_v62  ;;  %v875_v14 = vunpack.c.l.b16 %v1654_v0  ;;  %v2028_v8 = vld [vmem:[%s2348_s11 + $0x3c] sm:$0xe]  ;;  %v784_v32 = vrot.slane %v629_v58, 1  ;;  %v462_v61 = vshll.u32 %v2655_v27, 16 }
  0x92   : > { %v971_v28 = vsel %vm374_vm1, %v2585_v19, %v970_v20  ;;  %v702_v17 = vrot.slane %v700_v1, 1  ;;  %v779_v20 = vsel %vm511_vm0, %v777_v6, %v778_v7  ;;  %v2029_v48 = vor.u32 %v2028_v8, %v2621_v57  ;;  %v2034_v7 = vld [vmem:[%s2348_s11 + $0x54] sm:$0xe] }
  0x93   : > { %1289 = vmatpush.bf16.msra.mxu0 %v1717_v24  ;;  %1889 = vmatpush.bf16.msra.mxu1 %v1717_v24  ;;  %v2644_v22 = vpack.c.b16 %v875_v14, %v875_v14  ;;  %v785_v47 = vsel %vm511_vm0, %v783_v29, %v784_v32  ;;  %v949_v62 = vshrl.u32 %v2627_v4, 16  ;;  %v956_v0 = vshll.u32 %v885_v52, 16 }
  0x94   : > { %1890 = vmatpush.bf16.msra.mxu2 %v1717_v24  ;;  %v703_v25 = vsel %vm374_vm1, %v2477_v30, %v702_v17  ;;  %v1040_v6 = vrot.slane %v885_v52, 1 }
  0x95   : > { %1891 = vmatpush.bf16.msra.mxu3 %v1717_v24  ;;  %v932_v30 = vshll.u32 %v2644_v22, 16 }
  0x96   : > { %860 = vrot.lane.b32.xlu0 %v2548_v45, %s2191_s5  ;;  %477 = vrot.lane.b32.xlu2 %v422_v21, %s2909_s29  ;;  %v927_v21 = vshll.u32 %v2618_v44, 16 }
  0x98   : > { %542 = vrot.lane.b32.xlu1 %v523_v26, %s2193_s24  ;;  %v2603_v35 = vpop.permute.xlu2 %792  ;;  %v2031_v26 = vld [vmem:[%s2348_s11 + $0x54] sm:$0xe]  ;;  %v929_v33 = vrot.slane %v927_v21, 1 }
  0x9e   : > { %996 = vrot.lane.b32.xlu0 %v971_v28, %s2198_s30  ;;  %1060 = vrot.lane.b32.xlu2 %v1044_v38, %s2926_s8  ;;  %v2658_v28 = vld [vmem:[%s2348_s11 + $0x54] sm:$0xf0] }
  0x9f   : > { %v2035_v29 = vor.u32 %v2034_v7, %v2658_v28 }
  0xa0   : > { %598 = vrot.lane.b32.xlu1 %v2380_v40, %s2192_s23  ;;  %v2613_v53 = vpop.permute.xlu2 %475 }
  0xa1   : > { %v593_v56 = vpop.permute.xlu1 %592 }
  0xa6   : > { %481 = vrot.lane.b32.xlu0 %v446_v51, %s2909_s29  ;;  %546 = vrot.lane.b32.xlu2 %v529_v60, %s2193_s24  ;;  %v934_v51 = vrot.slane %v932_v30, 1  ;;  %v1034_v60 = vrot.slane %v2644_v22, 1 }
  0xa8   : > { %v537_v63 = vpop.permute.xlu0 %536  ;;  %602 = vrot.lane.b32.xlu1 %v2457_v2, %s2192_s23  ;;  %v2639_v13 = vpop.permute.xlu2 %596 }
  0xaa   : > { %v1049_v15 = vpop.permute.xlu1 %1048 }
  0xae   : > { %734 = vrot.lane.b32.xlu0 %v679_v12, %s2197_s9  ;;  %798 = vrot.lane.b32.xlu2 %v779_v20, %s2927_s28  ;;  %v1624_v12 = vld [vmem:[%s2348_s11 + $0x68] sm:$0x1]  ;;  %v958_v20 = vrot.slane %v956_v0, 1  ;;  %v2002_v0 = vld [vmem:[%s2348_s11 + $0x18] sm:$0xff]  }
  0xaf   : > { %v623_v8 = vunpack.c.l.b16 %v1624_v12 }
  0xb0   : > { %v472_v24 = vpop.permute.xlu0 %471  ;;  %854 = vrot.lane.b32.xlu1 %v2618_v44, %s2191_s5  ;;  %v2665_v34 = vpop.permute.xlu2 %600 }
  0xb1   : > { %v1066_v59 = vsel %vm1064_vm2, %v2361_v11, %v472_v24  ;;  %v925_v11 = vshrl.u32 %v2618_v44, 16  ;;  %v365_v44 = vunpack.c.l.b16 %v229_v41  ;;  %v1649_v24 = vld [vmem:[%s2348_s11 + $0x6c] sm:$0xff]   ;;  %v631_v32 = vpack.c.b16 %v623_v8, %v623_v8  ;;  %v1846_v41 = vld [vmem:[%s2348_s11 + $0x60] sm:$0xf0] }
  0xb2   : > { %v1083_v31 = vsel %vm1081_vm3, %v1066_v59, %v537_v63  ;;  %v729_v37 = vpop.permute.xlu1 %728  ;;  %v953_v63 = vrot.slane %v951_v39, 1  ;;  %v975_v28 = vshll.u32 %v1649_v24, 16 }
  0xb3   : > { %v1100_v38 = vsel %vm1098_vm4, %v1083_v31, %v593_v56  ;;  %v930_v50 = vor.u32 %v929_v33, %v925_v11  ;;  %v2032_v56 = vor.u32 %v2031_v26, %v2630_v3  ;;  %v373_v9 = vpack.c.b16 %v365_v44, %v365_v44  ;;  %v1658_v33 = vld [vmem:[%s2348_s11 + $0x74] sm:$0x1] }
  0xb4   : > { %v1117_v46 = vsel %vm1115_vm5, %v1100_v38, %v729_v37  ;;  %v954_v18 = vor.u32 %v953_v63, %v949_v62  ;;  %v724_v36 = vshll.u32 %v631_v32, 16  ;;  %v533_v37 = vrot.slane %v2035_v29, 1 }
  0xb5   : > { %v1134_v49 = vsel %vm1132_vm6, %v1117_v46, %v2603_v35  ;;  %v1033_v35 = vrot.slane %v2029_v48, 1  ;;  %v1039_v3 = vrot.slane %v2032_v56, 1  ;;  %v467_v17 = vshll.u32 %v373_v9, 16  ;;  %v1847_v46 = vld [vmem:[%s2348_s11 + $0x60] sm:$0xe] }
  0xb6   : > { %738 = vrot.lane.b32.xlu0 %v703_v25, %s2197_s9  ;;  %v1151_v54 = vsel %vm1149_vm7, %v1134_v49, %v2575_v5  ;;  %802 = vrot.lane.b32.xlu2 %v785_v47, %s2927_s28  ;;  %v935_v5 = vsel %vm374_vm1, %v930_v50, %v934_v51  ;;  %v959_v26 = vsel %vm374_vm1, %v954_v18, %v958_v20  ;;  %v534_v38 = vrot.slane %v373_v9, 1  ;;  %v2037_v51 = vld [vmem:[%s2348_s11 + $0x6c] sm:$0xe]  ;;  %s183_s11 = sand.u32 1, %s2165_s16  }
  0xb7   : > { %v1035_v14 = vsel %vm511_vm0, %v1033_v35, %v1034_v60  ;;  %v1041_v22 = vsel %vm511_vm0, %v1039_v3, %v1040_v6  ;;  %v469_v25 = vrot.slane %v467_v17, 1  ;;  %v879_v47 = vunpack.c.l.b16 %v1658_v33 }
  0xb8   : > { %v985_v55 = vpop.permute.xlu0 %984  ;;  %858 = vrot.lane.b32.xlu1 %v2627_v4, %s2191_s5  ;;  %v2689_v1 = vpop.permute.xlu2 %852  ;;  %v464_v4 = vrot.slane %v462_v61, 1  ;;  %v726_v48 = vrot.slane %v724_v36, 1  ;;  %v535_v49 = vsel %vm511_vm0, %v533_v37, %v534_v38  ;;  %v1848_v50 = vor.u32 %v1847_v46, %v1846_v41 }
  0xb9   : > { %v1168_v58 = vsel %vm1166_vm8, %v1151_v54, %v985_v55  ;;  %v887_v52 = vpack.c.b16 %v879_v47, %v879_v47  ;;  %v973_v44 = vshrl.u32 %v1649_v24, 16  ;;  %v790_v60 = vrot.slane %v631_v32, 1 }
  0xba   : > { %v1185_v57 = vsel %vm1183_vm9, %v1168_v58, %v1049_v15  ;;  %v2692_v10 = vpop.permute.xlu1 %479  ;;  %v460_v15 = vshrl.u32 %v2655_v27, 16  ;;  %v727_v56 = vsel %vm374_vm1, %v2585_v19, %v726_v48  ;;  %v977_v58 = vrot.slane %v975_v28, 1 }
  0xbb   : > { %1699 = vmatmul.msk.bf16.vlgmr.msra.gmra.mxu0 %vm1200_vm10, %v1185_v57  ;;  %v980_v57 = vshll.u32 %v887_v52, 16  ;;  %v789_v35 = vrot.slane %v1848_v50, 1  ;;  %v2038_v63 = vor.u32 %v2037_v51, %v2036_v16  ;;  %v1070_v3 = vsel %vm1064_vm2, %v2002_v0, %v2613_v53 }
  0xbc   : > { %v465_v59 = vor.u32 %v464_v4, %v460_v15  ;;  %v1074_v9 = vsel %vm1064_vm2, %v2380_v40, %v2692_v10  ;;  %v1046_v15 = vrot.slane %v887_v52, 1 }
  0xbd   : > { %v791_v62 = vsel %vm511_vm0, %v789_v35, %v790_v60 }
  0xbe   : > { %990 = vrot.lane.b32.xlu0 %v935_v5, %s2198_s30  ;;  %1054 = vrot.lane.b32.xlu2 %v1035_v14, %s2926_s8  ;;  %v470_v30 = vsel %vm374_vm1, %v465_v59, %v469_v25  ;;  %v982_v5 = vrot.slane %v980_v57, 1  ;;  %v1045_v14 = vrot.slane %v2038_v63, 1 }
  0xc0   : > { %v541_v21 = vpop.permute.xlu0 %540  ;;  %1058 = vrot.lane.b32.xlu1 %v1041_v22, %s2926_s8  ;;  %v2705_v31 = vpop.permute.xlu2 %856  ;;  %v1047_v20 = vsel %vm511_vm0, %v1045_v14, %v1046_v15 }
  0xc1   : > { %v1087_v12 = vsel %vm1081_vm3, %v1070_v3, %v541_v21 }
  0xc2   : > { %v733_v11 = vpop.permute.xlu1 %732  ;;  %v1104_v53 = vsel %vm1098_vm4, %v1087_v12, %v2639_v13 }
  0xc3   : > { %v1121_v18 = vsel %vm1115_vm5, %v1104_v53, %v733_v11 }
  0xc6   : > { %994 = vrot.lane.b32.xlu0 %v959_v26, %s2198_s30  ;;  %485 = vrot.lane.b32.xlu2 %v470_v30, %s2909_s29 }
  0xc8   : > { %v545_v39 = vpop.permute.xlu0 %544  ;;  %606 = vrot.lane.b32.xlu1 %v2548_v45, %s2192_s23  ;;  %v993_v55 = vpop.permute.xlu2 %992  ;;  %v978_v45 = vor.u32 %v977_v58, %v973_v44 }
  0xc9   : > { %v1091_v17 = vsel %vm1081_vm3, %v1074_v9, %v545_v39 }
  0xca   : > { %v737_v54 = vpop.permute.xlu1 %736  ;;  %v983_v7 = vsel %vm374_vm1, %v978_v45, %v982_v5  ;;  %v1108_v40 = vsel %vm1098_vm4, %v1091_v17, %v2665_v34 }
  0xcb   : > { %v1125_v21 = vsel %vm1115_vm5, %v1108_v40, %v737_v54 }
  0xce   : > { %550 = vrot.lane.b32.xlu0 %v535_v49, %s2193_s24  ;;  %742 = vrot.lane.b32.xlu2 %v727_v56, %s2197_s9  ;;  %s1709_s24 = sshll.u32 %s2177_s19, 1 }
  0xd0   : > { %v797_v61 = vpop.permute.xlu0 %796  ;;  %862 = vrot.lane.b32.xlu1 %v1649_v24, %s2191_s5  ;;  %v484_v6 = vpop.permute.xlu2 %483  ;;  %s1593_s5 = sshll.u32 %s183_s11, 6 }
  0xd1   : > { %v1138_v22 = vsel %vm1132_vm6, %v1121_v18, %v797_v61  ;;  %s2799_s23 = scalar_lea.vmem [#allocation2], %s1593_s5 }
  0xd2   : > { %v989_v19 = vpop.permute.xlu1 %988  ;;  %v1155_v8 = vsel %vm1149_vm7, %v1138_v22, %v2689_v1  ;;  %s1447_s5 = sshll.u32 %s2799_s23, 4  ;;  %s2822_s5 = int_to_ptr.vmem [resolvable:$true] %s1447_s5 }
  0xd3   : > { %v1172_v16 = vsel %vm1166_vm8, %v1155_v8, %v989_v19 }
  0xd6   : > { %806 = vrot.lane.b32.xlu0 %v791_v62, %s2927_s28  ;;  %998 = vrot.lane.b32.xlu2 %v983_v7, %s2198_s30  ;;  %s1428_s30 = scalar_lea.sflag [#allocation3], %s183_s11 }
  0xd8   : > { %v801_v4 = vpop.permute.xlu0 %800  ;;  %v731_v24 = vpop.permute.xlu2 %730 }
  0xd9   : > { %v1142_v13 = vsel %vm1132_vm6, %v1125_v21, %v801_v4 }
  0xda   : > { %v474_v10 = vpop.permute.xlu1 %473  ;;  %v1159_v26 = vsel %vm1149_vm7, %v1142_v13, %v2705_v31 }
  0xdb   : > { %v1176_v34 = vsel %vm1166_vm8, %v1159_v26, %v993_v55  ;;  %v1068_v39 = vsel %vm1064_vm2, %v2434_v42, %v474_v10  ;;  %v1078_v42 = vsel %vm1064_vm2, %v2457_v2, %v484_v6 }
  0xde   : > { %1062 = vrot.lane.b32.xlu0 %v1047_v20, %s2926_s8  ;;  %s1441_s8 = sadd.s32 %s2173_s18, %s1709_s24 }
  0xdf   : > { %s1725_s9 = sshll.u32 %s1441_s8, 6  ;;  %s1712_s8 = sshll.u32 %s2173_s18, 1 }
  0xe0   : > { %v1053_v59 = vpop.permute.xlu0 %1052  ;;  %v741_v11 = vpop.permute.xlu2 %740  ;;  %s1446_s28 = scalar_lea.hbm %s2901_s2, %s1725_s9  ;;  %s1713_s9 = sshll.u32 %s2177_s19, 2 }
  0xe1   : > { %v1189_v25 = vsel %vm1183_vm9, %v1172_v16, %v1053_v59  ;;  %s1449_s29 = sshll.u32 %s1446_s28, 4  ;;  %s1450_s29 = int_to_ptr.hbm [resolvable:$true] %s1449_s29 }
  0xe2   : > { %1701 = vmatmul.msk.bf16.vlgmr.msra.gmra.mxu1 %vm1200_vm10, %v1189_v25  ;;  %v1057_v29 = vpop.permute.xlu1 %1056  ;;  %s2053_s10 = sshra.s32 %s1450_s29, 4  ;;  %s2054_s10 = int_to_ptr.hbm [resolvable:$true] %s2053_s10 }
  0xe3   : > { %v1193_v32 = vsel %vm1183_vm9, %v1176_v34, %v1057_v29  ;;  %s2055_s28 = scalar_lea.hbm %s2054_s10, 64  ;;  %p2060_p9 = scmp.lt.s32.totalorder %s2054_s10, %s2901_s2 }
  0xe4   : > { %1703 = vmatmul.msk.bf16.vlgmr.msra.gmra.mxu2 %vm1200_vm10, %v1193_v32  ;;  %p2056_p2 = scmp.ne.s32.totalorder %s2054_s10, %s2055_s28  ;;  %p2061_p10 = scmp.lt.s32.totalorder %s2059_s26, %s2055_s28 }
  0xe6   : > { %p2057_p6 = pnand %p2056_p2, %p2295_p5  ;;  %p2062_p11 = por %p2061_p10, %p2060_p9 }
  0xe8   : > { %v539_v1 = vpop.permute.xlu0 %538  ;;  %v987_v36 = vpop.permute.xlu2 %986  ;;  %p2058_p8 = pneg %p2057_p6 }
  0xe9   : > { %v1085_v31 = vsel %vm1081_vm3, %v1068_v39, %v539_v1 }
  0xea   : > { %v549_v33 = vpop.permute.xlu1 %548  ;;  %p2063_p12 = pnand %p2062_p11, %p2058_p8 }
  0xeb   : > { %v1095_v44 = vsel %vm1081_vm3, %v1078_v42, %v549_v33 }
  0xf0   : > { %v595_v30 = vpop.permute.xlu0 %594  ;;  %v478_v47 = vpop.permute.xlu2 %477 }
  0xf1   : > { %v1102_v41 = vsel %vm1098_vm4, %v1085_v31, %v595_v30  ;;  %v1072_v12 = vsel %vm1064_vm2, %v2523_v23, %v478_v47 }
  0xf2   : > { %v795_v37 = vpop.permute.xlu1 %794  ;;  %v1119_v28 = vsel %vm1115_vm5, %v1102_v41, %v731_v24 }
  0xf3   : > { %v1136_v49 = vsel %vm1132_vm6, %v1119_v28, %v795_v37 }
  0xf8   : > { %v605_v38 = vpop.permute.xlu0 %604  ;;  %v1061_v55 = vpop.permute.xlu2 %1060 }
  0xf9   : > { %v1112_v58 = vsel %vm1098_vm4, %v1095_v44, %v605_v38 }
  0xfa   : > { %v805_v46 = vpop.permute.xlu1 %804  ;;  %v1129_v35 = vsel %vm1115_vm5, %v1112_v58, %v741_v11 }
  0xfb   : > { %v1146_v60 = vsel %vm1132_vm6, %v1129_v35, %v805_v46 }
 0x100   : > { %v851_v48 = vpop.permute.xlu0 %850  ;;  %v547_v62 = vpop.permute.xlu2 %546 }
 0x101   : > { %v1153_v50 = vsel %vm1149_vm7, %v1136_v49, %v851_v48 }
 0x102   : > { %v1170_v51 = vsel %vm1166_vm8, %v1153_v50, %v987_v36  ;;  %v1051_v52 = vpop.permute.xlu1 %1050 }
 0x103   : > { %v1187_v54 = vsel %vm1183_vm9, %v1170_v51, %v1051_v52 }
 0x104   : > { %1700 = vmatmul.msk.bf16.gmra.mxu0 %vm1200_vm10, %v1187_v54 }
 0x108   : > { %v861_v56 = vpop.permute.xlu0 %860  ;;  %v799_v3 = vpop.permute.xlu2 %798 }
 0x109   : > { %v1163_v61 = vsel %vm1149_vm7, %v1146_v60, %v861_v56 }
 0x10a   : > { %v543_v57 = vpop.permute.xlu1 %542 }
 0x10b   : > { %v1089_v15 = vsel %vm1081_vm3, %v1072_v12, %v543_v57 }
 0x110   : > { %v997_v45 = vpop.permute.xlu0 %996  ;;  %v803_v9 = vpop.permute.xlu2 %802 }
 0x111   : > { %v1180_v5 = vsel %vm1166_vm8, %v1163_v61, %v997_v45 }
 0x112   : > { %v1197_v2 = vsel %vm1183_vm9, %v1180_v5, %v1061_v55  ;;  %v599_v63 = vpop.permute.xlu1 %598 }
 0x113   : > { %1705 = vmatmul.msk.bf16.vlgmr.msra.gmra.mxu3 %vm1200_vm10, %v1197_v2  ;;  %v1106_v4 = vsel %vm1098_vm4, %v1089_v15, %v599_v63 }
 0x118   : > { %v482_v0 = vpop.permute.xlu0 %481  ;;  %v1055_v22 = vpop.permute.xlu2 %1054 }
 0x119   : > { %v1076_v18 = vsel %vm1064_vm2, %v2556_v43, %v482_v0 }
 0x11a   : > { %v603_v19 = vpop.permute.xlu1 %602  ;;  %v1093_v21 = vsel %vm1081_vm3, %v1076_v18, %v547_v62 }
 0x11b   : > { %v1110_v13 = vsel %vm1098_vm4, %v1093_v21, %v603_v19 }
 0x120   : > { %v735_v6 = vpop.permute.xlu0 %734  ;;  %v486_v29 = vpop.permute.xlu2 %485 }
 0x121   : > { %v1123_v53 = vsel %vm1115_vm5, %v1106_v4, %v735_v6  ;;  %v1080_v11 = vsel %vm1064_vm2, %v2655_v27, %v486_v29 }
 0x122   : > { %v855_v7 = vpop.permute.xlu1 %854  ;;  %v1140_v20 = vsel %vm1132_vm6, %v1123_v53, %v799_v3 }
 0x123   : > { %v1157_v40 = vsel %vm1149_vm7, %v1140_v20, %v855_v7 }
 0x128   : > { %v739_v14 = vpop.permute.xlu0 %738  ;;  %v743_v38 = vpop.permute.xlu2 %742 }
 0x129   : > { %v1127_v43 = vsel %vm1115_vm5, %v1110_v13, %v739_v14 }
 0x12a   : > { %v859_v17 = vpop.permute.xlu1 %858  ;;  %v1144_v16 = vsel %vm1132_vm6, %v1127_v43, %v803_v9 }
 0x12b   : > { %v1161_v59 = vsel %vm1149_vm7, %v1144_v16, %v859_v17 }
 0x130   : > { %v991_v10 = vpop.permute.xlu0 %990  ;;  %v999_v28 = vpop.permute.xlu2 %998 }
 0x131   : > { %v1174_v23 = vsel %vm1166_vm8, %v1157_v40, %v991_v10 }
 0x132   : > { %v1191_v8 = vsel %vm1183_vm9, %v1174_v23, %v1055_v22  ;;  %v1059_v24 = vpop.permute.xlu1 %1058 }
 0x133   : > { %1702 = vmatmul.msk.bf16.gmra.mxu1 %vm1200_vm10, %v1191_v8 }
 0x138   : > { %v1291_v25 = vpop.f32.mrf.mxu0  ;;  %v995_v26 = vpop.permute.xlu0 %994 }
 0x139   : > { %v1178_v34 = vsel %vm1166_vm8, %v1161_v59, %v995_v26  ;;  %v1389_v57 = vmul.f32 %v1291_v25, %v1291_v25 }
 0x13a   : > { %v1195_v32 = vsel %vm1183_vm9, %v1178_v34, %v1059_v24  ;;  %v607_v1 = vpop.permute.xlu1 %606 }
 0x13b   : > { %1704 = vmatmul.msk.bf16.gmra.mxu2 %vm1200_vm10, %v1195_v32 }
 0x140   : > { %v1293_v33 = vpop.f32.mrf.mxu0  ;;  %v551_v30 = vpop.permute.xlu0 %550 }
 0x141   : > { %v1777_v36 = vpack.c.bf16 %v1293_v33, %v1291_v25  ;;  %v1097_v37 = vsel %vm1081_vm3, %v1080_v11, %v551_v30  ;;  %v1390_v58 = vmul.f32 %v1293_v33, %v1293_v33  ;;  %v1363_v35 = vadd.f32 %v1293_v33, %v1291_v25 }
 0x142   : > { %v1114_v39 = vsel %vm1098_vm4, %v1097_v37, %v607_v1  ;;  %v863_v27 = vpop.permute.xlu1 %862 }
 0x143   : > { %1778 = vst [vmem:[%s2799_s23] sm:$0xff] %v1777_v36   ;;  %v1131_v41 = vsel %vm1115_vm5, %v1114_v39, %v743_v38  ;;  %v1405_v61 = vadd.f32 %v1390_v58, %v1389_v57 }
 0x148   : > { %v807_v31 = vpop.permute.xlu0 %806 }
 0x149   : > { %v1148_v46 = vsel %vm1132_vm6, %v1131_v41, %v807_v31 }
 0x14a   : > { %v1165_v47 = vsel %vm1149_vm7, %v1148_v46, %v863_v27 }
 0x14b   : > { %v1182_v48 = vsel %vm1166_vm8, %v1165_v47, %v999_v28 }
 0x150   : > { %v1063_v49 = vpop.permute.xlu0 %1062 }
 0x151   : > { %v1199_v50 = vsel %vm1183_vm9, %v1182_v48, %v1063_v49 }
 0x152   : > { %1706 = vmatmul.msk.bf16.gmra.mxu3 %vm1200_vm10, %v1199_v50 }
 0x15f   : > { %v1301_v51 = vpop.f32.mrf.mxu1 }
 0x160   : > { %v1393_v3 = vmul.f32 %v1301_v51, %v1301_v51 }
 0x167   : > { %v1303_v52 = vpop.f32.mrf.mxu1  ;;  %v1311_v42 = vpop.f32.mrf.mxu2 }
 0x168   : > { %v1787_v54 = vpack.c.bf16 %v1303_v52, %v1301_v51  ;;  %v1394_v4 = vmul.f32 %v1303_v52, %v1303_v52  ;;  %v1397_v13 = vmul.f32 %v1311_v42, %v1311_v42 }
 0x16a   : > { %1862 = vst [vmem:[%s2799_s23 + $0x10] sm:$0xff] %v1787_v54  }
 0x16f   : > { %v1313_v55 = vpop.f32.mrf.mxu2 }
 0x170   : > { %v1797_v56 = vpack.c.bf16 %v1313_v55, %v1311_v42  ;;  %v1398_v59 = vmul.f32 %v1313_v55, %v1313_v55 }
 0x172   : > { %1864 = vst [vmem:[%s2799_s23 + $0x20] sm:$0xff] %v1797_v56  }
 0x181   : > { %v1296_v44 = vpop.f32.mrf.mxu0 }
 0x182   : > { %v1391_v60 = vmul.f32 %v1296_v44, %v1296_v44  ;;  %v1364_v45 = vadd.f32 %v1363_v35, %v1296_v44 }
 0x184   : > { %v1406_v62 = vadd.f32 %v1405_v61, %v1391_v60 }
 0x189   : > { %v1298_v5 = vpop.f32.mrf.mxu0 }
 0x18a   : > { %v1782_v2 = vpack.c.bf16 %v1298_v5, %v1296_v44  ;;  %v1365_v63 = vadd.f32 %v1364_v45, %v1298_v5  ;;  %v1392_v0 = vmul.f32 %v1298_v5, %v1298_v5 }
 0x18c   : > { %1861 = vst [vmem:[%s2799_s23 + $0x8] sm:$0xff] %v1782_v2   ;;  %v1366_v19 = vadd.f32 %v1365_v63, %v1301_v51  ;;  %v1407_v6 = vadd.f32 %v1406_v62, %v1392_v0 }
 0x18e   : > { %v1408_v7 = vadd.f32 %v1407_v6, %v1393_v3  ;;  %v1367_v53 = vadd.f32 %v1366_v19, %v1303_v52 }
 0x190   : > { %v1409_v20 = vadd.f32 %v1408_v7, %v1394_v4 }
 0x196   : > { %v1321_v9 = vpop.f32.mrf.mxu3 }
 0x197   : > { %v1401_v36 = vmul.f32 %v1321_v9, %v1321_v9 }
 0x19e   : > { %v1323_v12 = vpop.f32.mrf.mxu3 }
 0x19f   : > { %v1807_v14 = vpack.c.bf16 %v1323_v12, %v1321_v9  ;;  %v1402_v41 = vmul.f32 %v1323_v12, %v1323_v12 }
 0x1a1   : > { %1866 = vst [vmem:[%s2799_s23 + $0x30] sm:$0xff] %v1807_v14  }
 0x1b0   : > { %v1306_v15 = vpop.f32.mrf.mxu1 }
 0x1b1   : > { %v1395_v17 = vmul.f32 %v1306_v15, %v1306_v15  ;;  %v1368_v18 = vadd.f32 %v1367_v53, %v1306_v15 }
 0x1b3   : > { %v1410_v40 = vadd.f32 %v1409_v20, %v1395_v17 }
 0x1b8   : > { %v1308_v22 = vpop.f32.mrf.mxu1 }
 0x1b9   : > { %v1792_v10 = vpack.c.bf16 %v1308_v22, %v1306_v15  ;;  %v1369_v23 = vadd.f32 %v1368_v18, %v1308_v22  ;;  %v1396_v21 = vmul.f32 %v1308_v22, %v1308_v22 }
 0x1bb   : > { %1863 = vst [vmem:[%s2799_s23 + $0x18] sm:$0xff] %v1792_v10   ;;  %v1411_v8 = vadd.f32 %v1410_v40, %v1396_v21  ;;  %v1370_v43 = vadd.f32 %v1369_v23, %v1311_v42 }
 0x1bd   : > { %v1412_v16 = vadd.f32 %v1411_v8, %v1397_v13  ;;  %v1371_v25 = vadd.f32 %v1370_v43, %v1313_v55 }
 0x1be   : > { %v1316_v24 = vpop.f32.mrf.mxu2 }
 0x1bf   : > { %v1399_v26 = vmul.f32 %v1316_v24, %v1316_v24  ;;  %v1413_v34 = vadd.f32 %v1412_v16, %v1398_v59  ;;  %v1372_v29 = vadd.f32 %v1371_v25, %v1316_v24 }
 0x1c1   : > { %v1414_v1 = vadd.f32 %v1413_v34, %v1399_v26 }
 0x1c6   : > { %v1318_v32 = vpop.f32.mrf.mxu2 }
 0x1c7   : > { %v1802_v11 = vpack.c.bf16 %v1318_v32, %v1316_v24  ;;  %v1373_v33 = vadd.f32 %v1372_v29, %v1318_v32  ;;  %v1400_v30 = vmul.f32 %v1318_v32, %v1318_v32 }
 0x1c9   : > { %1865 = vst [vmem:[%s2799_s23 + $0x28] sm:$0xff] %v1802_v11   ;;  %v1374_v37 = vadd.f32 %v1373_v33, %v1321_v9  ;;  %v1415_v38 = vadd.f32 %v1414_v1, %v1400_v30 }
 0x1cb   : > { %v1416_v39 = vadd.f32 %v1415_v38, %v1401_v36  ;;  %v1375_v46 = vadd.f32 %v1374_v37, %v1323_v12 }
 0x1cd   : > { %v1417_v28 = vadd.f32 %v1416_v39, %v1402_v41 }
 0x1d5   : > { %v1326_v31 = vpop.f32.mrf.mxu3 }
 0x1d6   : > { %v1403_v27 = vmul.f32 %v1326_v31, %v1326_v31  ;;  %v1376_v47 = vadd.f32 %v1375_v46, %v1326_v31 }
 0x1d8   : > { %v1418_v49 = vadd.f32 %v1417_v28, %v1403_v27 }
 0x1dd   : > { %v1328_v48 = vpop.f32.mrf.mxu3 }
 0x1de   : > { %v1812_v50 = vpack.c.bf16 %v1328_v48, %v1326_v31  ;;  %v1377_v51 = vadd.f32 %v1376_v47, %v1328_v48  ;;  %v1404_v52 = vmul.f32 %v1328_v48, %v1328_v48 }
 0x1e0   : > { %1867 = vst [vmem:[%s2799_s23 + $0x38] sm:$0xff] %v1812_v50   ;;  %v1378_v54 = vrot.slane %v1377_v51, 4  ;;  %v1419_v42 = vadd.f32 %v1418_v49, %v1404_v52 }
 0x1e1   : > { %2066 = shalt.err (!%p2063_p12)
}
 0x1e2   : > { %s2199_s18 = smov 64   ;;  %s2928_s19 = smov 4   ;;  %v1379_v55 = vadd.f32 %v1378_v54, %v1377_v51  ;;  %v1420_v56 = vrot.slane %v1419_v42, 4  ;;  %v1384_v57 = vlaneseq }
 0x1e3   : > { %1893 = dma.vmem_to_hbm [thread:$0]  (%p2295_p5), %s2822_s5, 1024, %s1450_s29, %s1428_s30, %s2199_s18, %s2199_s18, %s2928_s19  }
 0x1e4   : > { %s2929_s11 = sand.u32 1, %s2153_s13   ;;  %s1463_s1 = sadd.s32 %s1713_s9, %s1712_s8  ;;  %v1380_v44 = vrot.slane %v1379_v55, 2  ;;  %v1421_v58 = vadd.f32 %v1420_v56, %v1419_v42  ;;  %vm1386_vm11 = vcmp.lt.s32.totalorder %v1384_v57, 128 }
 0x1e5   : > { %s1594_s0 = sshll.u32 %s2929_s11, 1  ;;  %s1464_s23 = scalar_lea.hbm %s2902_s3, %s1463_s1 }
 0x1e6   : > { %v1381_v35 = vadd.f32 %v1380_v44, %v1379_v55  ;;  %v1422_v60 = vrot.slane %v1421_v58, 2  ;;  %s192_s4 = scalar_lea.vmem [#allocation4], %s1594_s0  ;;  %s1468_s5 = sshll.u32 %s1464_s23, 4  ;;  %s1469_s5 = int_to_ptr.hbm [resolvable:$true] %s1468_s5 }
 0x1e7   : > { %s1466_s29 = sshll.u32 %s192_s4, 4  ;;  %s2930_s24 = smov %s2929_s11  ;;  %s1467_s29 = int_to_ptr.vmem [resolvable:$true] %s1466_s29 }
 0x1e8   : > { %v1382_v61 = vrot.slane %v1381_v35, 1  ;;  %v1423_v45 = vadd.f32 %v1422_v60, %v1421_v58  ;;  %s1433_s8 = scalar_lea.sflag [#allocation5], %s2930_s24  ;;  %s2081_s9 = sshra.s32 %s1469_s5, 4  ;;  %s2082_s9 = int_to_ptr.hbm [resolvable:$true] %s2081_s9 }
 0x1e9   : > { %s2083_s30 = scalar_lea.hbm %s2082_s9, 2  ;;  %s2087_s18 = scalar_lea.hbm %s2902_s3, 8 }
 0x1ea   : > { %v1383_v5 = vadd.f32 %v1382_v61, %v1381_v35  ;;  %v1424_v62 = vrot.slane %v1423_v45, 1  ;;  %p2084_p5 = scmp.ne.s32.totalorder %s2082_s9, %s2083_s30  ;;  %p2088_p4 = scmp.lt.s32.totalorder %s2082_s9, %s2902_s3 }
 0x1eb   : > { %p2089_p2 = scmp.lt.s32.totalorder %s2087_s18, %s2083_s30 }
 0x1ec   : > { %v1425_v2 = vadd.f32 %v1424_v62, %v1423_v45  ;;  %1388 = vst.msk [vmem:[%s192_s4] sm:$0x1] %vm1386_vm11, %v1383_v5  ;;  %p2085_p13 = pnand %p2084_p5, %p2332_p0 }
 0x1ed   : > { %p2090_p6 = por %p2089_p2, %p2088_p4 }
 0x1ee   : > { %1426 = vst.msk [vmem:[%s192_s4 + $0x1] sm:$0x1] %vm1386_vm11, %v1425_v2  ;;  %p2086_p3 = pneg %p2085_p13 }
 0x1f0   : > { %p2091_p8 = pnand %p2090_p6, %p2086_p3 }
 0x1f2   : > { %2094 = shalt.err (!%p2091_p8)
}
 0x1f3   : > { %1894 = dma.vmem_to_hbm [thread:$0]  (%p2332_p0), %s1467_s29, 32, %s1469_s5, %s1433_s8  }
 0x1f4 PF: > { %s2931_s0 = sld [smem:[#allocation8_spill]]  ;;  %p1904_p9 = scmp.ge.s32.totalorder %s2189_s22, 2 }
 0x1f6   : > { %p1898_p10 = pnand %p1904_p9, %p2307_p7 }
 0x1f8   : > { %p1899_p11 = pneg %p1898_p10 }
 0x1fa   : > { %s1480_s1 = sand.u32 1, %s2931_s0  }
 0x1fb   : > { %s1481_s25 = scalar_lea.sflag [#allocation3], %s1480_s1 }
 0x1fc   : > { %2140 = dma.done.wait (%p1899_p11), %s1481_s25, 1024  }
 0x1fd   : > { %2142 = vsyncadd (%p1899_p11), %s1481_s25, 4294966272  ;;  %s1490_s26 = sand.u32 1, %s2149_s12   ;;  %p1901_p12 = pnand %p1904_p9, %p2338_p1 }
 0x1fe   : > { %s1491_s20 = scalar_lea.sflag [#allocation5], %s1490_s26 }
 0x1ff   : > { %p1902_p5 = pneg %p1901_p12 }
 0x201   : > { %2144 = dma.done.wait (%p1902_p5), %s1491_s20, 32  }
 0x202   : > { %2146 = vsyncadd (%p1902_p5), %s1491_s20, 4294967264  ;;  %s20_s22 = sadd.s32 1, %s2189_s22   ;;  %s2932_s6 = smov %s2322_s15 }
 0x203   : > { %p17_p0 = scmp.ge.s32.totalorder %s20_s22, 6   ;;  %s2933_s18 = sld [smem:[#allocation9_spill]] }
 0x204   : > { %s2934_s20 = sld [smem:[#allocation10_spill]]  ;;  %s2936_s12 = smov %s2153_s13 }
 0x205   : > { %s2935_s23 = sld [smem:[#allocation11_spill]]  ;;  %s2937_s13 = smov %s2157_s14 }
 0x206   : > { %s2938_s14 = smov %s2319_s27  ;;  %s2939_s15 = smov %s2165_s16 }
 0x207   : > { %s2940_s16 = smov %s2169_s17  ;;  %s2941_s17 = smov %s2932_s6 }
 0x208   : > { %s2942_s19 = smov %s2185_s21  ;;  %19 = sbr.rel (!%p17_p0) target bundleno = 12 (0xc), region = 83 }
 0x20b   : > { %s2943_s21 = smov %s2935_s23 }
 0x20d   :  { %1497 = vsyncpa [#allocation3], 1 }
 0x20e   :  { %1499 = vsyncpa [#allocation3 + $0x1], 1 }
 0x20f   :  { %1500 = vsyncpa [#allocation5], 1 }
 0x210   :  { %1502 = vsyncpa [#allocation5 + $0x1], 1 }

</bundles_post_ra>
